<compile_context>
chip_gen: v7x
topology: tpu7x:2x2x1
jax: 0.10.0
libtpu: 0.0.40
codegen_flags: <defaults>
</compile_context>

<pallas_src>
import functools
import math

import jax
import jax.numpy as jnp
from jax import lax
from jax.experimental import pallas as pl
from jax.experimental.pallas import tpu as pltpu


def _supcon_group_kernel(scale, eps_den, use_bf16_exp,
                         f_ref, labr_ref, labc_ref, out_ref):
    # f_ref    : (G, 2, C, N)  -- X^T / Y^T stacked (channels on sublanes, pixels on lanes)
    # labr_ref : (G, 1, N)     -- per-pixel labels, row layout
    # labc_ref : (G, N, 1)     -- same labels, column layout (no in-kernel transpose)
    # out_ref  : (G, 1, 128)   -- lane 0 = block loss, lane 1 = valid flag
    G = f_ref.shape[0]

    dn_gram = (((1,), (1,)), ((), ()))   # contract over N   -> (C, C)
    dn_mm = (((1,), (0,)), ((), ()))     # standard matmul   -> (C, N)
    dn_tn = (((0,), (0,)), ((), ()))     # contract over C   -> (N, N)
    lane = lax.broadcasted_iota(jnp.int32, (1, 128), 1)

    def one_block(g, carry):
        blk = f_ref[g]                      # (2, C, N)
        xt = blk[0]                         # (C, N)
        yt = blk[1]                         # (C, N)
        lab_r = labr_ref[g]                 # (1, N)
        lab_c = labc_ref[g]                 # (N, 1)

        # Small channel-space Grams (C x C).
        gxx = lax.dot_general(xt, xt, dn_gram, preferred_element_type=jnp.float32)
        gyy = lax.dot_general(yt, yt, dn_gram, preferred_element_type=jnp.float32)
        gxy = lax.dot_general(xt, yt, dn_gram, preferred_element_type=jnp.float32)

        # ||l1_i||^2 = x_i^T (X^T X) x_i  (l1/l2 never materialized).
        n1sq = jnp.sum(
            xt * lax.dot_general(gxx, xt, dn_mm, preferred_element_type=jnp.float32),
            axis=0, keepdims=True)                                   # (1, N)
        n2sq = jnp.sum(
            yt * lax.dot_general(gyy, yt, dn_mm, preferred_element_type=jnp.float32),
            axis=0, keepdims=True)                                   # (1, N)
        eps = 1e-8
        # Fold the 0.5/temperature similarity scale into the row normalizer so
        # the final MXU output is already exp()'s argument.
        inv1 = lax.rsqrt(jnp.maximum(n1sq, eps * eps)) * scale       # (1, N)
        inv2 = lax.rsqrt(jnp.maximum(n2sq, eps * eps))               # (1, N)

        # sim[i, j] = 0.5/T * cos(l1_i, l2_j)
        #           = [(X diag(inv1))^T] @ [((X^T Y) Y^T) diag(inv2)]
        t = lax.dot_general(gxy, yt, dn_mm, preferred_element_type=jnp.float32)
        sim = lax.dot_general(xt * inv1, t * inv2, dn_tn,
                              preferred_element_type=jnp.float32)    # (N, N)

        if use_bf16_exp:
            # v6e/v7x: bf16 EUP path ~doubles throughput on the binding unit.
            e = jnp.exp(sim.astype(jnp.bfloat16)).astype(jnp.float32)
        else:
            e = jnp.exp(sim)

        eq = lab_c == lab_r                                          # (N, N)
        pos = jnp.sum(jnp.where(eq, e, 0.0), axis=1, keepdims=True)  # (N, 1)
        tot = jnp.sum(e, axis=1, keepdims=True)                      # (N, 1)
        # eps_den = 1e-6 * exp(-0.5/T): keeps parity with the un-folded
        # exp((cos+1)*0.5/T) formulation of the reference.
        loss_prob = -jnp.log(pos * pl.reciprocal(tot + eps_den, approx=True) + 1e-6)

        non_bg = lab_c != 0.0                                        # (N, 1)
        cnt = jnp.sum(jnp.where(lab_r != 0.0, 1.0, 0.0))
        block_loss = (jnp.sum(jnp.where(non_bg, loss_prob, 0.0))
                      / jnp.maximum(cnt, 1.0))

        # Block is skipped in PyTorch when block_label.sum() == 0.
        valid = jnp.sum(lab_r) != 0.0
        out_ref[g] = jnp.where(lane == 0, jnp.where(valid, block_loss, 0.0),
                               jnp.where(lane == 1, jnp.where(valid, 1.0, 0.0), 0.0))
        return carry

    lax.fori_loop(0, G, one_block, 0, unroll=True)


def _pick_group_size(n_blocks, max_group=8):
    """Largest divisor G of n_blocks (<= max_group), preferring an even grid
    extent so v7x's two TensorCores split the block axis evenly."""
    best, best_key = 1, (-1, -1)
    for g in range(1, min(max_group, n_blocks) + 1):
        if n_blocks % g:
            continue
        steps = n_blocks // g
        key = (1 if steps % 2 == 0 else 0, g)
        if key > best_key:
            best, best_key = g, key
    return best


def _auto_exp_dtype():
    """bf16 exp on v6e/v7x (bf16 EUP), f32 on v5e and older."""
    try:
        kind = jax.devices()[0].device_kind.lower()
    except Exception:
        return jnp.float32
    if any(tag in kind for tag in ("v2", "v3", "v4", "v5")):
        return jnp.float32
    return jnp.bfloat16


def block_con_loss(features, label, block_size=8, temperature=0.7,
                   exp_dtype=None, max_group=8):
    """Pallas implementation of BlockConLoss.forward."""
    B, two, C, H, W = features.shape
    assert two == 2
    bs = block_size
    div = W // bs                    # PyTorch uses image_size = shape[-1]
    n_blocks = div * div
    N = B * bs * bs

    if exp_dtype is None:
        exp_dtype = _auto_exp_dtype()
    use_bf16_exp = exp_dtype == jnp.bfloat16

    # ---- glue: carve the image into blocks; per block build the stacked
    # (2, C, N) slab with pixel columns ordered (b, h, w) b-major (matches the
    # PyTorch permute/reshape and the label flattening).  No channel pad. ----
    f = features[:, :, :, :div * bs, :div * bs].astype(jnp.float32)
    f = f.reshape(B, 2, C, div, bs, div, bs)
    f = jnp.transpose(f, (3, 5, 1, 2, 0, 4, 6))      # (di, dj, 2, C, B, bs, bs)
    f = f.reshape(n_blocks, 2, C, N)

    lab = label[:, :div * bs, :div * bs].astype(jnp.float32)
    lab = lab.reshape(B, div, bs, div, bs)
    lab = jnp.transpose(lab, (1, 3, 0, 2, 4)).reshape(n_blocks, N)
    lab_row = lab.reshape(n_blocks, 1, N)
    lab_col = lab.reshape(n_blocks, N, 1)   # tiny side input; avoids XLU transpose

    G = _pick_group_size(n_blocks, max_group)
    grid = (n_blocks // G,)

    scale = 0.5 / float(temperature)
    eps_den = 1e-6 * math.exp(-scale)

    kernel = functools.partial(_supcon_group_kernel, scale, eps_den, use_bf16_exp)

    out = pl.pallas_call(
        kernel,
        out_shape=jax.ShapeDtypeStruct((n_blocks, 1, 128), jnp.float32),
        grid_spec=pltpu.PrefetchScalarGridSpec(
            num_scalar_prefetch=0,
            grid=grid,
            in_specs=[
                pl.BlockSpec((G, 2, C, N), lambda b: (b, 0, 0, 0)),
                pl.BlockSpec((G, 1, N), lambda b: (b, 0, 0)),
                pl.BlockSpec((G, N, 1), lambda b: (b, 0, 0)),
            ],
            out_specs=pl.BlockSpec((G, 1, 128), lambda b: (b, 0, 0)),
        ),
        compiler_params=pltpu.CompilerParams(
            # Blocks are fully independent -> shard the step axis across v7x's
            # two TensorCores (no-op on v5e/v6e).
            dimension_semantics=("parallel",),
            # Let XLA fuse the wrapper-side layout shuffle into the input DMA.
            allow_input_fusion=[True, True, True],
            # Ample headroom; actual per-step working set is <~2 MiB at N=128,
            # and 32 MiB stays under v7x's 64 MiB physical VMEM.
            vmem_limit_bytes=32 * 1024 * 1024),
    )(f, lab_row, lab_col)

    losses = out[:, 0, 0]         # per-block loss (0 where skipped)
    valids = out[:, 0, 1]         # 1.0 where block_label.sum() != 0
    n_valid = valids.sum()
    # torch returns 0.0 when no block contributes
    return jnp.where(n_valid > 0,
                     losses.sum() / jnp.maximum(n_valid, 1.0),
                     jnp.float32(0.0))


# ------------------------- pure-JAX reference -------------------------------
def _supcon_ref(X, Y, lab, temp):
    l1 = (X @ X.T) / temp
    l2 = (Y @ Y.T) / temp
    dots = l1 @ l2.T
    n1 = jnp.sqrt((l1 * l1).sum(1, keepdims=True))
    n2 = jnp.sqrt((l2 * l2).sum(1, keepdims=True))
    cos = dots / (jnp.maximum(n1, 1e-8) * jnp.maximum(n2, 1e-8).T)
    sim = ((cos + 1.0) / 2.0) / temp
    e = jnp.exp(sim)
    mask = (lab[:, None] == lab[None, :]).astype(jnp.float32)
    pos = (mask * e).sum(1, keepdims=True)
    tot = e.sum(1, keepdims=True)
    lp = -jnp.log(pos / (tot + 1e-6) + 1e-6)
    nb = (lab != 0).astype(jnp.float32)[:, None]
    return (lp * nb).sum() / nb.sum()


def _block_ref(features, label, bs, temp):
    B, _, C, H, W = features.shape
    div = W // bs
    losses = []
    for i in range(div):
        for j in range(div):
            bf = features[:, :, :, i * bs:(i + 1) * bs, j * bs:(j + 1) * bs]
            bl = label[:, i * bs:(i + 1) * bs, j * bs:(j + 1) * bs]
            if float(bl.sum()) == 0.0:
                continue
            X = jnp.transpose(bf[:, 0], (0, 2, 3, 1)).reshape(-1, C)
            Y = jnp.transpose(bf[:, 1], (0, 2, 3, 1)).reshape(-1, C)
            losses.append(_supcon_ref(X.astype(jnp.float32),
                                      Y.astype(jnp.float32),
                                      bl.reshape(-1).astype(jnp.float32),
                                      temp))
    if not losses:
        return jnp.float32(0.0)
    return jnp.stack(losses).mean()


if __name__ == "__main__":
    key = jax.random.PRNGKey(0)
    kf, kl = jax.random.split(key)

    B, C, H, W = 2, 4, 16, 16
    bs = 8                                   # block_size (4 blocks, N = 128)
    features = jax.random.normal(kf, (B, 2, C, H, W), dtype=jnp.float32)
    label = (jax.random.uniform(kl, (B, H, W)) > 0.5).astype(jnp.float32)

    loss_fn = jax.jit(functools.partial(block_con_loss,
                                        block_size=bs, temperature=0.7))
    out = jax.block_until_ready(loss_fn(features, label))

    ref = _block_ref(features, label, bs, 0.7)
    assert bool(jnp.isfinite(out)), out
    assert abs(float(out) - float(ref)) <= 5e-2 * max(1.0, abs(float(ref))), (
        float(out), float(ref))

    print("KERNEL_OK")
</pallas_src>

<mosaic_0001>
module attributes {stable_mosaic.version = 11 : i64} {
  func.func @_supcon_group_kernel(%arg0: i32, %arg1: memref<2x2x4x128xf32, #tpu.memory_space<vmem>>, %arg2: memref<2x1x128xf32, #tpu.memory_space<vmem>>, %arg3: memref<2x128x1xf32, #tpu.memory_space<vmem>>, %arg4: memref<2x1x128xf32, #tpu.memory_space<vmem>>) attributes {dimension_semantics = [#tpu.dimension_semantics<parallel>], iteration_bounds = array<i64: 2>, scalar_prefetch = 0 : i64, scratch_operands = 0 : i64, tpu.core_type = #tpu.core_type<tc>, window_params = [{transform_indices = @transform_0, window_bounds = array<i64: 2, 2, 4, 128>}, {transform_indices = @transform_1, window_bounds = array<i64: 2, 1, 128>}, {transform_indices = @transform_2, window_bounds = array<i64: 2, 128, 1>}, {transform_indices = @transform_3, window_bounds = array<i64: 2, 1, 128>}]} {
    %0 = tpu.iota {dimensions = array<i32: 1>} : vector<1x128xi32>
    %c0_i32 = arith.constant 0 : i32
    %1 = arith.index_cast %c0_i32 : i32 to index
    %c0 = arith.constant 0 : index
    %c0_0 = arith.constant 0 : index
    %c0_1 = arith.constant 0 : index
    %2 = vector.load %arg1[%1, %c0, %c0_0, %c0_1] : memref<2x2x4x128xf32, #tpu.memory_space<vmem>>, vector<1x2x4x128xf32>
    %3 = vector.shape_cast %2 : vector<1x2x4x128xf32> to vector<2x4x128xf32>
    %4 = vector.extract_strided_slice %3 {offsets = [0, 0, 0], sizes = [1, 4, 128], strides = [1, 1, 1]} : vector<2x4x128xf32> to vector<1x4x128xf32>
    %5 = vector.shape_cast %4 : vector<1x4x128xf32> to vector<4x128xf32>
    %6 = vector.extract_strided_slice %3 {offsets = [1, 0, 0], sizes = [1, 4, 128], strides = [1, 1, 1]} : vector<2x4x128xf32> to vector<1x4x128xf32>
    %7 = vector.shape_cast %6 : vector<1x4x128xf32> to vector<4x128xf32>
    %8 = arith.index_cast %c0_i32 : i32 to index
    %c0_2 = arith.constant 0 : index
    %c0_3 = arith.constant 0 : index
    %9 = vector.load %arg2[%8, %c0_2, %c0_3] : memref<2x1x128xf32, #tpu.memory_space<vmem>>, vector<1x1x128xf32>
    %10 = vector.shape_cast %9 : vector<1x1x128xf32> to vector<1x128xf32>
    %11 = arith.index_cast %c0_i32 : i32 to index
    %c0_4 = arith.constant 0 : index
    %c0_5 = arith.constant 0 : index
    %12 = vector.load %arg3[%11, %c0_4, %c0_5] : memref<2x128x1xf32, #tpu.memory_space<vmem>>, vector<1x128x1xf32>
    %13 = vector.shape_cast %12 : vector<1x128x1xf32> to vector<128x1xf32>
    %cst = arith.constant dense<0.000000e+00> : vector<4x4xf32>
    %14 = tpu.matmul %5, %5, %cst {dimension_numbers = #tpu.dot_dimension_numbers<[1], [1], [0], [0], [0, 0, 1, 0], [], []>} : vector<4x128xf32>, vector<4x128xf32>, vector<4x4xf32> -> vector<4x4xf32>
    %cst_6 = arith.constant dense<0.000000e+00> : vector<4x4xf32>
    %15 = tpu.matmul %7, %7, %cst_6 {dimension_numbers = #tpu.dot_dimension_numbers<[1], [1], [0], [0], [0, 0, 1, 0], [], []>} : vector<4x128xf32>, vector<4x128xf32>, vector<4x4xf32> -> vector<4x4xf32>
    %cst_7 = arith.constant dense<0.000000e+00> : vector<4x4xf32>
    %16 = tpu.matmul %5, %7, %cst_7 {dimension_numbers = #tpu.dot_dimension_numbers<[1], [1], [0], [0], [0, 0, 1, 0], [], []>} : vector<4x128xf32>, vector<4x128xf32>, vector<4x4xf32> -> vector<4x4xf32>
    %cst_8 = arith.constant dense<0.000000e+00> : vector<4x128xf32>
    %17 = tpu.matmul %14, %5, %cst_8 {dimension_numbers = #tpu.dot_dimension_numbers<[1], [0], [0], [1], [0, 0, 1, 1], [], []>} : vector<4x4xf32>, vector<4x128xf32>, vector<4x128xf32> -> vector<4x128xf32>
    %18 = arith.mulf %5, %17 : vector<4x128xf32>
    %cst_9 = arith.constant dense<0.000000e+00> : vector<128xf32>
    %19 = vector.multi_reduction <add>, %18, %cst_9 [0] : vector<4x128xf32> to vector<128xf32>
    %20 = vector.shape_cast %19 : vector<128xf32> to vector<1x128xf32>
    %cst_10 = arith.constant dense<0.000000e+00> : vector<4x128xf32>
    %21 = tpu.matmul %15, %7, %cst_10 {dimension_numbers = #tpu.dot_dimension_numbers<[1], [0], [0], [1], [0, 0, 1, 1], [], []>} : vector<4x4xf32>, vector<4x128xf32>, vector<4x128xf32> -> vector<4x128xf32>
    %22 = arith.mulf %7, %21 : vector<4x128xf32>
    %cst_11 = arith.constant dense<0.000000e+00> : vector<128xf32>
    %23 = vector.multi_reduction <add>, %22, %cst_11 [0] : vector<4x128xf32> to vector<128xf32>
    %24 = vector.shape_cast %23 : vector<128xf32> to vector<1x128xf32>
    %cst_12 = arith.constant 1.000000e-16 : f32
    %25 = vector.broadcast %cst_12 : f32 to vector<1x128xf32>
    %26 = arith.maximumf %20, %25 : vector<1x128xf32>
    %27 = math.rsqrt %26 : vector<1x128xf32>
    %cst_13 = arith.constant 0.714285731 : f32
    %28 = vector.broadcast %cst_13 : f32 to vector<1x128xf32>
    %29 = arith.mulf %27, %28 : vector<1x128xf32>
    %cst_14 = arith.constant 1.000000e-16 : f32
    %30 = vector.broadcast %cst_14 : f32 to vector<1x128xf32>
    %31 = arith.maximumf %24, %30 : vector<1x128xf32>
    %32 = math.rsqrt %31 : vector<1x128xf32>
    %cst_15 = arith.constant dense<0.000000e+00> : vector<4x128xf32>
    %33 = tpu.matmul %16, %7, %cst_15 {dimension_numbers = #tpu.dot_dimension_numbers<[1], [0], [0], [1], [0, 0, 1, 1], [], []>} : vector<4x4xf32>, vector<4x128xf32>, vector<4x128xf32> -> vector<4x128xf32>
    %34 = vector.broadcast %29 : vector<1x128xf32> to vector<4x128xf32>
    %35 = arith.mulf %5, %34 : vector<4x128xf32>
    %36 = vector.broadcast %32 : vector<1x128xf32> to vector<4x128xf32>
    %37 = arith.mulf %33, %36 : vector<4x128xf32>
    %cst_16 = arith.constant dense<0.000000e+00> : vector<128x128xf32>
    %38 = tpu.matmul %35, %37, %cst_16 {dimension_numbers = #tpu.dot_dimension_numbers<[0], [0], [1], [1], [0, 1, 1, 1], [], []>} : vector<4x128xf32>, vector<4x128xf32>, vector<128x128xf32> -> vector<128x128xf32>
    %39 = arith.truncf %38 : vector<128x128xf32> to vector<128x128xbf16>
    %40 = math.exp %39 : vector<128x128xbf16>
    %41 = arith.extf %40 : vector<128x128xbf16> to vector<128x128xf32>
    %42 = vector.broadcast %13 : vector<128x1xf32> to vector<128x128xf32>
    %43 = vector.broadcast %10 : vector<1x128xf32> to vector<128x128xf32>
    %44 = arith.cmpf oeq, %42, %43 : vector<128x128xf32>
    %cst_17 = arith.constant 0.000000e+00 : f32
    %45 = vector.broadcast %cst_17 : f32 to vector<128x128xf32>
    %46 = arith.select %44, %41, %45 : vector<128x128xi1>, vector<128x128xf32>
    %cst_18 = arith.constant dense<0.000000e+00> : vector<128xf32>
    %47 = vector.multi_reduction <add>, %46, %cst_18 [1] : vector<128x128xf32> to vector<128xf32>
    %48 = vector.shape_cast %47 : vector<128xf32> to vector<128x1xf32>
    %cst_19 = arith.constant dense<0.000000e+00> : vector<128xf32>
    %49 = vector.multi_reduction <add>, %41, %cst_19 [1] : vector<128x128xf32> to vector<128xf32>
    %50 = vector.shape_cast %49 : vector<128xf32> to vector<128x1xf32>
    %cst_20 = arith.constant 4.89541662E-7 : f32
    %51 = vector.broadcast %cst_20 : f32 to vector<128x1xf32>
    %52 = arith.addf %50, %51 : vector<128x1xf32>
    %53 = tpu.reciprocal %52 {approx = true} : vector<128x1xf32> -> vector<128x1xf32>
    %54 = arith.mulf %48, %53 : vector<128x1xf32>
    %cst_21 = arith.constant 9.99999997E-7 : f32
    %55 = vector.broadcast %cst_21 : f32 to vector<128x1xf32>
    %56 = arith.addf %54, %55 : vector<128x1xf32>
    %57 = math.log %56 : vector<128x1xf32>
    %cst_22 = arith.constant 0.000000e+00 : f32
    %58 = vector.broadcast %cst_22 : f32 to vector<128x1xf32>
    %59 = arith.subf %58, %57 : vector<128x1xf32>
    %cst_23 = arith.constant 0.000000e+00 : f32
    %60 = vector.broadcast %cst_23 : f32 to vector<128x1xf32>
    %61 = arith.cmpf one, %13, %60 : vector<128x1xf32>
    %cst_24 = arith.constant 0.000000e+00 : f32
    %62 = vector.broadcast %cst_24 : f32 to vector<1x128xf32>
    %63 = arith.cmpf one, %10, %62 : vector<1x128xf32>
    %cst_25 = arith.constant 1.000000e+00 : f32
    %cst_26 = arith.constant 0.000000e+00 : f32
    %64 = vector.broadcast %cst_25 : f32 to vector<1x128xf32>
    %65 = vector.broadcast %cst_26 : f32 to vector<1x128xf32>
    %66 = arith.select %63, %64, %65 : vector<1x128xi1>, vector<1x128xf32>
    %67 = vector.shape_cast %66 : vector<1x128xf32> to vector<1x1x128xf32>
    %cst_27 = arith.constant dense<0.000000e+00> : vector<1xf32>
    %68 = vector.multi_reduction <add>, %67, %cst_27 [1, 2] : vector<1x1x128xf32> to vector<1xf32>
    %69 = vector.shape_cast %68 : vector<1xf32> to vector<1x1x1xf32>
    %70 = vector.extract %69[0, 0, 0] : f32 from vector<1x1x1xf32>
    %cst_28 = arith.constant 0.000000e+00 : f32
    %71 = vector.broadcast %cst_28 : f32 to vector<128x1xf32>
    %72 = arith.select %61, %59, %71 : vector<128x1xi1>, vector<128x1xf32>
    %73 = vector.shape_cast %72 : vector<128x1xf32> to vector<1x128x1xf32>
    %cst_29 = arith.constant dense<0.000000e+00> : vector<1xf32>
    %74 = vector.multi_reduction <add>, %73, %cst_29 [1, 2] : vector<1x128x1xf32> to vector<1xf32>
    %75 = vector.shape_cast %74 : vector<1xf32> to vector<1x1x1xf32>
    %76 = vector.extract %75[0, 0, 0] : f32 from vector<1x1x1xf32>
    %cst_30 = arith.constant 1.000000e+00 : f32
    %77 = arith.maximumf %70, %cst_30 : f32
    %78 = arith.divf %76, %77 : f32
    %79 = vector.shape_cast %10 : vector<1x128xf32> to vector<1x1x128xf32>
    %cst_31 = arith.constant dense<0.000000e+00> : vector<1xf32>
    %80 = vector.multi_reduction <add>, %79, %cst_31 [1, 2] : vector<1x1x128xf32> to vector<1xf32>
    %81 = vector.shape_cast %80 : vector<1xf32> to vector<1x1x1xf32>
    %82 = vector.extract %81[0, 0, 0] : f32 from vector<1x1x1xf32>
    %cst_32 = arith.constant 0.000000e+00 : f32
    %83 = arith.cmpf one, %82, %cst_32 : f32
    %c0_i32_33 = arith.constant 0 : i32
    %84 = vector.broadcast %c0_i32_33 : i32 to vector<1x128xi32>
    %85 = arith.cmpi eq, %0, %84 : vector<1x128xi32>
    %cst_34 = arith.constant 0.000000e+00 : f32
    %86 = arith.select %83, %78, %cst_34 : f32
    %c1_i32 = arith.constant 1 : i32
    %87 = vector.broadcast %c1_i32 : i32 to vector<1x128xi32>
    %88 = arith.cmpi eq, %0, %87 : vector<1x128xi32>
    %cst_35 = arith.constant 1.000000e+00 : f32
    %cst_36 = arith.constant 0.000000e+00 : f32
    %89 = arith.select %83, %cst_35, %cst_36 : f32
    %cst_37 = arith.constant 0.000000e+00 : f32
    %90 = vector.broadcast %89 : f32 to vector<1x128xf32>
    %91 = vector.broadcast %cst_37 : f32 to vector<1x128xf32>
    %92 = arith.select %88, %90, %91 : vector<1x128xi1>, vector<1x128xf32>
    %93 = vector.broadcast %86 : f32 to vector<1x128xf32>
    %94 = arith.select %85, %93, %92 : vector<1x128xi1>, vector<1x128xf32>
    %95 = arith.index_cast %c0_i32 : i32 to index
    %c0_38 = arith.constant 0 : index
    %c0_39 = arith.constant 0 : index
    %96 = vector.load %arg4[%95, %c0_38, %c0_39] : memref<2x1x128xf32, #tpu.memory_space<vmem>>, vector<1x1x128xf32>
    %97 = vector.shape_cast %96 : vector<1x1x128xf32> to vector<1x128xf32>
    %98 = vector.shape_cast %94 : vector<1x128xf32> to vector<1x1x128xf32>
    tpu.vector_store %arg4[%95, %c0_38, %c0_39], %98 {strides = array<i32>} : memref<2x1x128xf32, #tpu.memory_space<vmem>>, vector<1x1x128xf32>,
    %c1_i32_40 = arith.constant 1 : i32
    %99 = arith.index_cast %c1_i32_40 : i32 to index
    %c0_41 = arith.constant 0 : index
    %c0_42 = arith.constant 0 : index
    %c0_43 = arith.constant 0 : index
    %100 = vector.load %arg1[%99, %c0_41, %c0_42, %c0_43] : memref<2x2x4x128xf32, #tpu.memory_space<vmem>>, vector<1x2x4x128xf32>
    %101 = vector.shape_cast %100 : vector<1x2x4x128xf32> to vector<2x4x128xf32>
    %102 = vector.extract_strided_slice %101 {offsets = [0, 0, 0], sizes = [1, 4, 128], strides = [1, 1, 1]} : vector<2x4x128xf32> to vector<1x4x128xf32>
    %103 = vector.shape_cast %102 : vector<1x4x128xf32> to vector<4x128xf32>
    %104 = vector.extract_strided_slice %101 {offsets = [1, 0, 0], sizes = [1, 4, 128], strides = [1, 1, 1]} : vector<2x4x128xf32> to vector<1x4x128xf32>
    %105 = vector.shape_cast %104 : vector<1x4x128xf32> to vector<4x128xf32>
    %106 = arith.index_cast %c1_i32_40 : i32 to index
    %c0_44 = arith.constant 0 : index
    %c0_45 = arith.constant 0 : index
    %107 = vector.load %arg2[%106, %c0_44, %c0_45] : memref<2x1x128xf32, #tpu.memory_space<vmem>>, vector<1x1x128xf32>
    %108 = vector.shape_cast %107 : vector<1x1x128xf32> to vector<1x128xf32>
    %109 = arith.index_cast %c1_i32_40 : i32 to index
    %c0_46 = arith.constant 0 : index
    %c0_47 = arith.constant 0 : index
    %110 = vector.load %arg3[%109, %c0_46, %c0_47] : memref<2x128x1xf32, #tpu.memory_space<vmem>>, vector<1x128x1xf32>
    %111 = vector.shape_cast %110 : vector<1x128x1xf32> to vector<128x1xf32>
    %cst_48 = arith.constant dense<0.000000e+00> : vector<4x4xf32>
    %112 = tpu.matmul %103, %103, %cst_48 {dimension_numbers = #tpu.dot_dimension_numbers<[1], [1], [0], [0], [0, 0, 1, 0], [], []>} : vector<4x128xf32>, vector<4x128xf32>, vector<4x4xf32> -> vector<4x4xf32>
    %cst_49 = arith.constant dense<0.000000e+00> : vector<4x4xf32>
    %113 = tpu.matmul %105, %105, %cst_49 {dimension_numbers = #tpu.dot_dimension_numbers<[1], [1], [0], [0], [0, 0, 1, 0], [], []>} : vector<4x128xf32>, vector<4x128xf32>, vector<4x4xf32> -> vector<4x4xf32>
    %cst_50 = arith.constant dense<0.000000e+00> : vector<4x4xf32>
    %114 = tpu.matmul %103, %105, %cst_50 {dimension_numbers = #tpu.dot_dimension_numbers<[1], [1], [0], [0], [0, 0, 1, 0], [], []>} : vector<4x128xf32>, vector<4x128xf32>, vector<4x4xf32> -> vector<4x4xf32>
    %cst_51 = arith.constant dense<0.000000e+00> : vector<4x128xf32>
    %115 = tpu.matmul %112, %103, %cst_51 {dimension_numbers = #tpu.dot_dimension_numbers<[1], [0], [0], [1], [0, 0, 1, 1], [], []>} : vector<4x4xf32>, vector<4x128xf32>, vector<4x128xf32> -> vector<4x128xf32>
    %116 = arith.mulf %103, %115 : vector<4x128xf32>
    %cst_52 = arith.constant dense<0.000000e+00> : vector<128xf32>
    %117 = vector.multi_reduction <add>, %116, %cst_52 [0] : vector<4x128xf32> to vector<128xf32>
    %118 = vector.shape_cast %117 : vector<128xf32> to vector<1x128xf32>
    %cst_53 = arith.constant dense<0.000000e+00> : vector<4x128xf32>
    %119 = tpu.matmul %113, %105, %cst_53 {dimension_numbers = #tpu.dot_dimension_numbers<[1], [0], [0], [1], [0, 0, 1, 1], [], []>} : vector<4x4xf32>, vector<4x128xf32>, vector<4x128xf32> -> vector<4x128xf32>
    %120 = arith.mulf %105, %119 : vector<4x128xf32>
    %cst_54 = arith.constant dense<0.000000e+00> : vector<128xf32>
    %121 = vector.multi_reduction <add>, %120, %cst_54 [0] : vector<4x128xf32> to vector<128xf32>
    %122 = vector.shape_cast %121 : vector<128xf32> to vector<1x128xf32>
    %cst_55 = arith.constant 1.000000e-16 : f32
    %123 = vector.broadcast %cst_55 : f32 to vector<1x128xf32>
    %124 = arith.maximumf %118, %123 : vector<1x128xf32>
    %125 = math.rsqrt %124 : vector<1x128xf32>
    %cst_56 = arith.constant 0.714285731 : f32
    %126 = vector.broadcast %cst_56 : f32 to vector<1x128xf32>
    %127 = arith.mulf %125, %126 : vector<1x128xf32>
    %cst_57 = arith.constant 1.000000e-16 : f32
    %128 = vector.broadcast %cst_57 : f32 to vector<1x128xf32>
    %129 = arith.maximumf %122, %128 : vector<1x128xf32>
    %130 = math.rsqrt %129 : vector<1x128xf32>
    %cst_58 = arith.constant dense<0.000000e+00> : vector<4x128xf32>
    %131 = tpu.matmul %114, %105, %cst_58 {dimension_numbers = #tpu.dot_dimension_numbers<[1], [0], [0], [1], [0, 0, 1, 1], [], []>} : vector<4x4xf32>, vector<4x128xf32>, vector<4x128xf32> -> vector<4x128xf32>
    %132 = vector.broadcast %127 : vector<1x128xf32> to vector<4x128xf32>
    %133 = arith.mulf %103, %132 : vector<4x128xf32>
    %134 = vector.broadcast %130 : vector<1x128xf32> to vector<4x128xf32>
    %135 = arith.mulf %131, %134 : vector<4x128xf32>
    %cst_59 = arith.constant dense<0.000000e+00> : vector<128x128xf32>
    %136 = tpu.matmul %133, %135, %cst_59 {dimension_numbers = #tpu.dot_dimension_numbers<[0], [0], [1], [1], [0, 1, 1, 1], [], []>} : vector<4x128xf32>, vector<4x128xf32>, vector<128x128xf32> -> vector<128x128xf32>
    %137 = arith.truncf %136 : vector<128x128xf32> to vector<128x128xbf16>
    %138 = math.exp %137 : vector<128x128xbf16>
    %139 = arith.extf %138 : vector<128x128xbf16> to vector<128x128xf32>
    %140 = vector.broadcast %111 : vector<128x1xf32> to vector<128x128xf32>
    %141 = vector.broadcast %108 : vector<1x128xf32> to vector<128x128xf32>
    %142 = arith.cmpf oeq, %140, %141 : vector<128x128xf32>
    %cst_60 = arith.constant 0.000000e+00 : f32
    %143 = vector.broadcast %cst_60 : f32 to vector<128x128xf32>
    %144 = arith.select %142, %139, %143 : vector<128x128xi1>, vector<128x128xf32>
    %cst_61 = arith.constant dense<0.000000e+00> : vector<128xf32>
    %145 = vector.multi_reduction <add>, %144, %cst_61 [1] : vector<128x128xf32> to vector<128xf32>
    %146 = vector.shape_cast %145 : vector<128xf32> to vector<128x1xf32>
    %cst_62 = arith.constant dense<0.000000e+00> : vector<128xf32>
    %147 = vector.multi_reduction <add>, %139, %cst_62 [1] : vector<128x128xf32> to vector<128xf32>
    %148 = vector.shape_cast %147 : vector<128xf32> to vector<128x1xf32>
    %cst_63 = arith.constant 4.89541662E-7 : f32
    %149 = vector.broadcast %cst_63 : f32 to vector<128x1xf32>
    %150 = arith.addf %148, %149 : vector<128x1xf32>
    %151 = tpu.reciprocal %150 {approx = true} : vector<128x1xf32> -> vector<128x1xf32>
    %152 = arith.mulf %146, %151 : vector<128x1xf32>
    %cst_64 = arith.constant 9.99999997E-7 : f32
    %153 = vector.broadcast %cst_64 : f32 to vector<128x1xf32>
    %154 = arith.addf %152, %153 : vector<128x1xf32>
    %155 = math.log %154 : vector<128x1xf32>
    %cst_65 = arith.constant 0.000000e+00 : f32
    %156 = vector.broadcast %cst_65 : f32 to vector<128x1xf32>
    %157 = arith.subf %156, %155 : vector<128x1xf32>
    %cst_66 = arith.constant 0.000000e+00 : f32
    %158 = vector.broadcast %cst_66 : f32 to vector<128x1xf32>
    %159 = arith.cmpf one, %111, %158 : vector<128x1xf32>
    %cst_67 = arith.constant 0.000000e+00 : f32
    %160 = vector.broadcast %cst_67 : f32 to vector<1x128xf32>
    %161 = arith.cmpf one, %108, %160 : vector<1x128xf32>
    %cst_68 = arith.constant 1.000000e+00 : f32
    %cst_69 = arith.constant 0.000000e+00 : f32
    %162 = vector.broadcast %cst_68 : f32 to vector<1x128xf32>
    %163 = vector.broadcast %cst_69 : f32 to vector<1x128xf32>
    %164 = arith.select %161, %162, %163 : vector<1x128xi1>, vector<1x128xf32>
    %165 = vector.shape_cast %164 : vector<1x128xf32> to vector<1x1x128xf32>
    %cst_70 = arith.constant dense<0.000000e+00> : vector<1xf32>
    %166 = vector.multi_reduction <add>, %165, %cst_70 [1, 2] : vector<1x1x128xf32> to vector<1xf32>
    %167 = vector.shape_cast %166 : vector<1xf32> to vector<1x1x1xf32>
    %168 = vector.extract %167[0, 0, 0] : f32 from vector<1x1x1xf32>
    %cst_71 = arith.constant 0.000000e+00 : f32
    %169 = vector.broadcast %cst_71 : f32 to vector<128x1xf32>
    %170 = arith.select %159, %157, %169 : vector<128x1xi1>, vector<128x1xf32>
    %171 = vector.shape_cast %170 : vector<128x1xf32> to vector<1x128x1xf32>
    %cst_72 = arith.constant dense<0.000000e+00> : vector<1xf32>
    %172 = vector.multi_reduction <add>, %171, %cst_72 [1, 2] : vector<1x128x1xf32> to vector<1xf32>
    %173 = vector.shape_cast %172 : vector<1xf32> to vector<1x1x1xf32>
    %174 = vector.extract %173[0, 0, 0] : f32 from vector<1x1x1xf32>
    %cst_73 = arith.constant 1.000000e+00 : f32
    %175 = arith.maximumf %168, %cst_73 : f32
    %176 = arith.divf %174, %175 : f32
    %177 = vector.shape_cast %108 : vector<1x128xf32> to vector<1x1x128xf32>
    %cst_74 = arith.constant dense<0.000000e+00> : vector<1xf32>
    %178 = vector.multi_reduction <add>, %177, %cst_74 [1, 2] : vector<1x1x128xf32> to vector<1xf32>
    %179 = vector.shape_cast %178 : vector<1xf32> to vector<1x1x1xf32>
    %180 = vector.extract %179[0, 0, 0] : f32 from vector<1x1x1xf32>
    %cst_75 = arith.constant 0.000000e+00 : f32
    %181 = arith.cmpf one, %180, %cst_75 : f32
    %c0_i32_76 = arith.constant 0 : i32
    %182 = vector.broadcast %c0_i32_76 : i32 to vector<1x128xi32>
    %183 = arith.cmpi eq, %0, %182 : vector<1x128xi32>
    %cst_77 = arith.constant 0.000000e+00 : f32
    %184 = arith.select %181, %176, %cst_77 : f32
    %c1_i32_78 = arith.constant 1 : i32
    %185 = vector.broadcast %c1_i32_78 : i32 to vector<1x128xi32>
    %186 = arith.cmpi eq, %0, %185 : vector<1x128xi32>
    %cst_79 = arith.constant 1.000000e+00 : f32
    %cst_80 = arith.constant 0.000000e+00 : f32
    %187 = arith.select %181, %cst_79, %cst_80 : f32
    %cst_81 = arith.constant 0.000000e+00 : f32
    %188 = vector.broadcast %187 : f32 to vector<1x128xf32>
    %189 = vector.broadcast %cst_81 : f32 to vector<1x128xf32>
    %190 = arith.select %186, %188, %189 : vector<1x128xi1>, vector<1x128xf32>
    %191 = vector.broadcast %184 : f32 to vector<1x128xf32>
    %192 = arith.select %183, %191, %190 : vector<1x128xi1>, vector<1x128xf32>
    %193 = arith.index_cast %c1_i32_40 : i32 to index
    %c0_82 = arith.constant 0 : index
    %c0_83 = arith.constant 0 : index
    %194 = vector.load %arg4[%193, %c0_82, %c0_83] : memref<2x1x128xf32, #tpu.memory_space<vmem>>, vector<1x1x128xf32>
    %195 = vector.shape_cast %194 : vector<1x1x128xf32> to vector<1x128xf32>
    %196 = vector.shape_cast %192 : vector<1x128xf32> to vector<1x1x128xf32>
    tpu.vector_store %arg4[%193, %c0_82, %c0_83], %196 {strides = array<i32>} : memref<2x1x128xf32, #tpu.memory_space<vmem>>, vector<1x1x128xf32>,
    %c2_i32 = arith.constant 2 : i32
    return
  }
  func.func @transform_0(%arg0: i32) -> (i32, i32, i32, i32) {
    %c0_i32 = arith.constant 0 : i32
    %c0_i32_0 = arith.constant 0 : i32
    %c0_i32_1 = arith.constant 0 : i32
    %c0_i32_2 = arith.constant 0 : i32
    return %arg0, %c0_i32, %c0_i32_0, %c0_i32_1 : i32, i32, i32, i32
  }
  func.func @transform_1(%arg0: i32) -> (i32, i32, i32) {
    %c0_i32 = arith.constant 0 : i32
    %c0_i32_0 = arith.constant 0 : i32
    %c0_i32_1 = arith.constant 0 : i32
    return %arg0, %c0_i32, %c0_i32_0 : i32, i32, i32
  }
  func.func @transform_2(%arg0: i32) -> (i32, i32, i32) {
    %c0_i32 = arith.constant 0 : i32
    %c0_i32_0 = arith.constant 0 : i32
    %c0_i32_1 = arith.constant 0 : i32
    return %arg0, %c0_i32, %c0_i32_0 : i32, i32, i32
  }
  func.func @transform_3(%arg0: i32) -> (i32, i32, i32) {
    %c0_i32 = arith.constant 0 : i32
    %c0_i32_0 = arith.constant 0 : i32
    %c0_i32_1 = arith.constant 0 : i32
    return %arg0, %c0_i32, %c0_i32_0 : i32, i32, i32
  }
}

</mosaic_0001>

<bundles_post_ra>
// kernel: block_con_loss.1
= control target key start
LH: loop header
LB: loop body
LE: loop exit
PB: predicated region body
PF: predicated region fallthrough
CT: control target
= control target key end

     0   :  { %s3122_s12 = smov 0   ;;  %s3564_s0 = inlined_call_operand.vmem [shape: f32[4,2,4,128], index: 0, kind: input, shape index: {}]   ;;  %s3565_s1 = inlined_call_operand.vmem [shape: f32[4,1,128], index: 1, kind: input, shape index: {}]   ;;  %s3566_s2 = inlined_call_operand.vmem [shape: f32[4,128,1], index: 2, kind: input, shape index: {}]   ;;  %s3567_s3 = inlined_call_operand.vmem [shape: f32[4,1,128], index: 3, kind: output, shape index: {}]  }
   0x1 LB: > { %s2610_s13 = sadd.s32 4294967295, %s3096_s12   ;;  %p2614_p0 = scmp.ge.s32.totalorder %s3096_s12, 1  ;;  %s3096_s12 = sphi %s3122_s12, %s13_s12  }
   0x2   : > { %p161_p1 = scmp.lt.s32.totalorder %s3096_s12, 3 }
   0x4   : > { %p162_p2 = pnand %p2614_p0, %p161_p1 }
   0x5   : > { %s2615_s14 = sshll.u32 (!%p162_p2), %s2610_s13, 1  ;;  %v3098_v0 = vmov (!%p162_p2), 0.0   ;;  %vm3099_vm0 = vmmov (!%p162_p2), 0   ;;  %vm454_vm1 = vcmask (!%p162_p2), 1043456   ;;  %v3100_v4 = vmov (!%p162_p2), 0   ;;  %s3101_s27 = smov (!%p162_p2), 1.0  }
   0x6   : > { %165 = sbr.rel (%p162_p2) target bundleno = 1517 (0x5ed), region = 32  ;;  %2751 = vmatprep.subr.mxu0 (!%p162_p2), %v3098_v0  ;;  %2756 = vmatprep.subr.mxu1 (!%p162_p2), %v3098_v0  ;;  %p196_p3 = scmp.lt.s32.totalorder (!%p162_p2), %s2615_s14, 3  ;;  %vm450_vm2 = vcmask (!%p162_p2), 31744  }
   0x7   : > { %2753 = vmatprep.mubr.msk.f32.mxu0 (!%p162_p2), %vm3099_vm0, %v3098_v0  ;;  %2758 = vmatprep.mubr.msk.f32.mxu1 (!%p162_p2), %vm3099_vm0, %v3098_v0 }
   0x8   : > { %2894 = vset.pattern.permute.xlu0 (!%p162_p2), %v3100_v4  ;;  %2893 = vset.pattern.permute.xlu1 (!%p162_p2), %v3100_v4 }
   0xd   : > { %s3569_s14 = smov (!%p196_p3, %s2615_s14), 3 }
   0xe   : > { %s2691_s15 = sshll.u32 %s3569_s14, 3  ;;  %s2692_s19 = sshll.u32 %s3569_s14, 7 }
   0xf   : > { %s3142_s18 = scalar_lea.vmem %s3564_s0, %s2691_s15  ;;  %s3168_s22 = scalar_lea.vmem %s3566_s2, %s2692_s19 }
  0x10   : > { %v3145_v1 = vld [vmem:[%s3142_s18] sm:$0xf]  ;;  %v222_v2 = vld [vmem:[%s3142_s18 + $0x4] sm:$0xf]  ;;  %v2651_v3 = vld [vmem:[%s3168_s22 + $0x90] sm:$0xff]  ;;  %s3325_s25 = scalar_lea.vmem %s3565_s1, %s3569_s14  ;;  %s3552_s9 = scalar_lea.vmem %s3567_s3, %s3569_s14 }
  0x11   : > { %2752 = vmatpush3.xpose.msra.mxu0 %v3145_v1  ;;  %2757 = vmatpush3.xpose.msra.mxu1 %v222_v2  ;;  %v2654_v5 = vld [vmem:[%s3168_s22 + $0xa8] sm:$0xff]  ;;  %v2656_v14 = vld [vmem:[%s3168_s22 + $0xb8] sm:$0xff]  ;;  %v3225_v50 = vld [vmem:[%s3168_s22] sm:$0xff] }
  0x12   : > { %2761 = vmatprep.subr.mxu0 %v3098_v0  ;;  %2766 = vmatprep.subr.mxu1 %v3098_v0  ;;  %v3180_v12 = vld [vmem:[%s3142_s18 + $0x8] sm:$0xf]  ;;  %v3187_v13 = vld [vmem:[%s3142_s18 + $0xc] sm:$0xf]  ;;  %v3234_v53 = vld [vmem:[%s3168_s22 + $0x10] sm:$0xff] }
  0x13   : > { %2149 = vperm.xlu0 %2894, %v2651_v3   ;;  %978 = vperm.xlu1 %2893, %v3225_v50   ;;  %v3229_v51 = vld [vmem:[%s3168_s22 + $0x8] sm:$0xff]  ;;  %v3238_v54 = vld [vmem:[%s3168_s22 + $0x18] sm:$0xff]  ;;  %v3242_v55 = vld [vmem:[%s3168_s22 + $0x20] sm:$0xff] }
  0x14   : > { %2754 = vmatmul.mubr.f32.vlgmr.msra.gmra.mrb[0].mxu0 %v3145_v1  ;;  %2759 = vmatmul.mubr.f32.vlgmr.msra.gmra.mrb[0].mxu1 %v222_v2  ;;  %v2658_v52 = vld [vmem:[%s3168_s22 + $0xc8] sm:$0xff]  ;;  %v3254_v59 = vld [vmem:[%s3168_s22 + $0x30] sm:$0xff]  ;;  %v3258_v60 = vld [vmem:[%s3168_s22 + $0x38] sm:$0xff] }
  0x15   : > { %2762 = vmatpush3.xpose.msra.mxu0 %v222_v2  ;;  %2763 = vmatprep.mubr.msk.f32.mxu0 %vm3099_vm0, %v3098_v0  ;;  %v3248_v57 = vld [vmem:[%s3168_s22 + $0x28] sm:$0xff]  ;;  %v3264_v62 = vld [vmem:[%s3168_s22 + $0x40] sm:$0xff]  ;;  %v234_v3 = vld [vmem:[%s3168_s22 + $0x50] sm:$0xff] }
  0x16   : > { %2767 = vmatpush3.msk.msra.mxu1 %vm454_vm1, %v3145_v1  ;;  %2771 = vmatprep.subr.mxu0 %v3098_v0 }
  0x17   : > { %2768 = vmatprep.mubr.msk.f32.mxu1 %vm3099_vm0, %v3098_v0  ;;  %2776 = vmatprep.subr.mxu1 %v3098_v0 }
  0x18   : > { %2764 = vmatmul.mubr.f32.vlgmr.msra.gmra.mrb[2].mxu0 %v3145_v1  ;;  %2164 = vperm.xlu0 %2894, %v2654_v5   ;;  %v235_v5 = vld [vmem:[%s3168_s22 + $0x58] sm:$0xff] }
  0x19   : > { %2772 = vmatpush3.msk.msra.mxu0 %vm454_vm1, %v222_v2  ;;  %2773 = vmatprep.mubr.msk.f32.mxu0 %vm3099_vm0, %v3098_v0 }
  0x1a   : > { %983 = vperm.xlu1 %2893, %v3229_v51  }
  0x1c   : > { %2174 = vperm.xlu0 %2894, %v2656_v14  }
  0x1e   : > { %988 = vperm.xlu1 %2893, %v3234_v53  }
  0x22   : > { %993 = vperm.xlu1 %2893, %v3238_v54  }
  0x26   : > { %998 = vperm.xlu1 %2893, %v3242_v55  }
  0x2a   : > { %1003 = vperm.xlu1 %2893, %v3248_v57  }
  0x2e   : > { %1008 = vperm.xlu1 %2893, %v3254_v59  }
  0x32   : > { %1013 = vperm.xlu1 %2893, %v3258_v60  }
  0x36   : > { %1018 = vperm.xlu1 %2893, %v3264_v62  }
  0x92   : > { %v3244_v56 = vpop.permute.xlu0 %2149 }
  0x97   : > { %v3251_v58 = vpop.permute.xlu0 %2164 }
  0x9b   : > { %v3260_v61 = vpop.permute.xlu0 %2174 }
  0xe7   : > { %v306_v6 = vpop.f32.mrb[0].mxu0  ;;  %v376_v7 = vpop.f32.mrb[0].mxu1 }
  0xe8   : > { %v2755_v8 = vpop.f32.mrb[1].mxu0  ;;  %2769 = vmatmul.mubr.msk.f32.vlgmr.msra.gmra.mrb[2].mxu1 %vm450_vm2, %v306_v6  ;;  %2774 = vmatmul.mubr.msk.f32.vlgmr.msra.gmra.mrb[4].mxu0 %vm450_vm2, %v376_v7  ;;  %v2760_v9 = vpop.f32.mrb[1].mxu1  ;;  %v236_v7 = vld [vmem:[%s3168_s22 + $0x60] sm:$0xff] }
  0xe9   : > { %2777 = vmatpush3.msk.msra.mxu1 %vm454_vm1, %v222_v2  ;;  %2778 = vmatprep.mubr.msk.f32.mxu1 %vm3099_vm0, %v3098_v0  ;;  %v237_v9 = vld [vmem:[%s3168_s22 + $0x68] sm:$0xff] }
  0xea   : > { %2807 = vmatprep.subr.mxu1 %v3098_v0 }
  0xeb   : > { %v446_v10 = vpop.f32.mrb[2].mxu0 }
  0xec   : > { %v2765_v11 = vpop.f32.mrb[3].mxu0  ;;  %2779 = vmatmul.mubr.msk.f32.vlgmr.msra.gmra.mrb[4].mxu1 %vm450_vm2, %v446_v10 }
  0xed   : > { %2809 = vmatprep.mubr.msk.f32.mxu1 %vm3099_vm0, %v3098_v0  ;;  %v238_v11 = vld [vmem:[%s3168_s22 + $0x70] sm:$0xff] }
  0xf0   : > { %2808 = vmatpush3.xpose.msra.mxu1 %v3180_v12 }
  0xf1   : > { %2812 = vmatprep.subr.mxu1 %v3098_v0 }
  0xf3   : > { %2810 = vmatmul.mubr.f32.vlgmr.msra.gmra.mrb[6].mxu1 %v3180_v12 }
  0xf4   : > { %2813 = vmatpush3.xpose.msra.mxu1 %v3187_v13  ;;  %2814 = vmatprep.mubr.msk.f32.mxu1 %vm3099_vm0, %v3098_v0 }
  0xf5   : > { %2817 = vmatprep.subr.mxu1 %v3098_v0 }
  0xf7   : > { %2815 = vmatmul.mubr.f32.vlgmr.msra.gmra.mrb[8].mxu1 %v3187_v13 }
  0xf8   : > { %2818 = vmatpush3.xpose.msra.mxu1 %v3187_v13  ;;  %2819 = vmatprep.mubr.msk.f32.mxu1 %vm3099_vm0, %v3098_v0 }
  0xf9   : > { %2822 = vmatprep.subr.mxu1 %v3098_v0 }
  0xfb   : > { %2820 = vmatmul.mubr.f32.vlgmr.msra.gmra.mrb[10].mxu1 %v3180_v12 }
  0xfc   : > { %2823 = vmatpush3.msk.msra.mxu1 %vm454_vm1, %v3180_v12  ;;  %2824 = vmatprep.mubr.msk.f32.mxu1 %vm3099_vm0, %v3098_v0 }
  0xfd   : > { %2827 = vmatprep.subr.mxu1 %v3098_v0 }
 0x1bb   : > { %v524_v15 = vpop.f32.mrb[2].mxu1  ;;  %v608_v16 = vpop.f32.mrb[4].mxu0 }
 0x1bc   : > { %v528_v17 = vmul.f32 %v524_v15, %v3145_v1  ;;  %v612_v18 = vmul.f32 %v608_v16, %v222_v2  ;;  %v2770_v19 = vpop.f32.mrb[3].mxu1  ;;  %v2775_v20 = vpop.f32.mrb[5].mxu0  ;;  %v239_v15 = vld [vmem:[%s3168_s22 + $0x78] sm:$0xff] }
 0x1bd   : > { %v2650_v19 = vld [vmem:[%s3168_s22 + $0x88] sm:$0xff] }
 0x1be   : > { %v529_v21 = vsel %vm454_vm1, %v528_v17, 0.0  ;;  %v613_v22 = vsel %vm454_vm1, %v612_v18, 0.0  ;;  %v2649_v17 = vld [vmem:[%s3168_s22 + $0x80] sm:$0xff] }
 0x1bf   : > { %v530_v23 = vrot.slane %v529_v21, 4  ;;  %v614_v24 = vrot.slane %v613_v22, 4  ;;  %v694_v25 = vpop.f32.mrb[4].mxu1 }
 0x1c0   : > { %v2780_v26 = vpop.f32.mrb[5].mxu1 }
 0x1c1   : > { %v531_v27 = vadd.f32 %v530_v23, %v529_v21  ;;  %v615_v28 = vadd.f32 %v614_v24, %v613_v22  ;;  %v2652_v21 = vld [vmem:[%s3168_s22 + $0x98] sm:$0xff]  ;;  %v2653_v23 = vld [vmem:[%s3168_s22 + $0xa0] sm:$0xff] }
 0x1c3   : > { %v532_v29 = vrot.slane %v531_v27, 2  ;;  %v616_v30 = vrot.slane %v615_v28, 2 }
 0x1c5   : > { %v533_v31 = vadd.f32 %v532_v29, %v531_v27  ;;  %v617_v32 = vadd.f32 %v616_v30, %v615_v28  ;;  %v2657_v27 = vld [vmem:[%s3168_s22 + $0xc0] sm:$0xff]  ;;  %v2659_v29 = vld [vmem:[%s3168_s22 + $0xd0] sm:$0xff] }
 0x1c6   : > { %v1469_v33 = vpop.f32.mrb[6].mxu1 }
 0x1c7   : > { %v534_v34 = vrot.slane %v533_v31, 1  ;;  %v618_v35 = vrot.slane %v617_v32, 1  ;;  %v2811_v36 = vpop.f32.mrb[7].mxu1  ;;  %2825 = vmatmul.mubr.msk.f32.vlgmr.msra.gmra.mrb[12].mxu1 %vm450_vm2, %v1469_v33  ;;  %v2663_v33 = vld [vmem:[%s3168_s22 + $0xf0] sm:$0xff] }
 0x1c8   : > { %2828 = vmatpush3.msk.msra.mxu1 %vm454_vm1, %v3187_v13  ;;  %2829 = vmatprep.mubr.msk.f32.mxu1 %vm3099_vm0, %v3098_v0 }
 0x1c9   : > { %v535_v37 = vadd.f32 %v534_v34, %v533_v31  ;;  %v619_v38 = vadd.f32 %v618_v35, %v617_v32  ;;  %2832 = vmatprep.subr.mxu1 %v3098_v0  ;;  %v2661_v31 = vld [vmem:[%s3168_s22 + $0xe0] sm:$0xff] }
 0x1ca   : > { %v1539_v39 = vpop.f32.mrb[8].mxu1 }
 0x1cb   : > { %v620_v40 = vmax.f32 %v535_v37, 1e-16  ;;  %v623_v41 = vmax.f32 %v619_v38, 1e-16  ;;  %2830 = vmatmul.mubr.msk.f32.vlgmr.msra.gmra.mrb[14].mxu1 %vm450_vm2, %v1539_v39  ;;  %v2816_v42 = vpop.f32.mrb[9].mxu1 }
 0x1cc   : > { %2833 = vmatpush3.msk.msra.mxu1 %vm454_vm1, %v3187_v13  ;;  %2834 = vmatprep.mubr.msk.f32.mxu1 %vm3099_vm0, %v3098_v0 }
 0x1cd   : > { %2895 = vrsqrt.f32 %v620_v40 }
 0x1ce   : > { %2897 = vrsqrt.f32 %v623_v41  ;;  %v1609_v43 = vpop.f32.mrb[10].mxu1 }
 0x1cf   : > { %2835 = vmatmul.mubr.msk.f32.vlgmr.msra.gmra.mrb[16].mxu1 %vm450_vm2, %v1609_v43  ;;  %v2821_v44 = vpop.f32.mrb[11].mxu1 }
 0x1d7   : > { %v2896_v45 = vpop.eup %2895 }
 0x1d8   : > { %v2898_v46 = vpop.eup %2897  ;;  %v622_v47 = vmul.f32 0.71428573, %v2896_v45 }
 0x1d9   : > { %v699_v48 = vmul.f32 %v2898_v46, %v694_v25  ;;  %v2655_v25 = vld [vmem:[%s3168_s22 + $0xb0] sm:$0xff] }
 0x1da   : > { %v698_v49 = vmul.f32 %v622_v47, %v3145_v1  ;;  %v3268_v1 = vld [vmem:[%s3168_s22 + $0x48] sm:$0xff] }
 0x1db   : > { %2781 = vmatprep.subr.msk.mxu0 %vm454_vm1, %v699_v48  ;;  %1023 = vperm.xlu1 %2893, %v3268_v1  }
 0x1dc   : > { %2782 = vmatpush3.msk.msra.mxu0 %vm454_vm1, %v699_v48  ;;  %700 = vxpose.xlu0.b32.start.end [1/1] (short) %v698_v49, 128 }
 0x1df   : > { %1028 = vperm.xlu1 %2893, %v234_v3  }
 0x1e3   : > { %1033 = vperm.xlu1 %2893, %v235_v5  }
 0x1e7   : > { %1038 = vperm.xlu1 %2893, %v236_v7  }
 0x1eb   : > { %1043 = vperm.xlu1 %2893, %v237_v9  }
 0x1ef   : > { %1048 = vperm.xlu1 %2893, %v238_v11  }
 0x1f3   : > { %1053 = vperm.xlu1 %2893, %v239_v15   ;;  %v2662_v15 = vld [vmem:[%s3168_s22 + $0xe8] sm:$0xff] }
 0x1f7   : > { %2139 = vperm.xlu1 %2893, %v2649_v17  }
 0x1fb   : > { %2144 = vperm.xlu1 %2893, %v2650_v19  }
 0x1ff   : > { %2154 = vperm.xlu1 %2893, %v2652_v21  }
 0x203   : > { %2159 = vperm.xlu1 %2893, %v2653_v23   ;;  %v219_v23 = vlaneseq }
 0x207   : > { %2169 = vperm.xlu1 %2893, %v2655_v25  }
 0x20b   : > { %2179 = vperm.xlu1 %2893, %v2657_v27   ;;  %v3318_v27 = vshrl.u32 %v219_v23, 7 }
 0x20f   : > { %2189 = vperm.xlu1 %2893, %v2659_v29  }
 0x213   : > { %2199 = vperm.xlu1 %2893, %v2661_v31   ;;  %v3328_v31 = vld [vmem:[%s3325_s25] sm:$0x1] }
 0x217   : > { %2209 = vperm.xlu1 %2893, %v2663_v33   ;;  %v1059_v33 = vsub.s32 0, %v3318_v27 }
 0x241   : > { %2184 = vperm.xlu0 %2894, %v2658_v52  }
 0x25c   : > { %v716_v63 = vpop.trf.xlu0 }
 0x25d   : > { %2783 = vmatprep.mubr.msk.f32.mxu0 %vm450_vm2, %v716_v63 }
 0x260   : > { %v717_v2 = vpop.trf.xlu0 }
 0x261   : > { %2784 = vmatmul.mubr.msk.f32.vlgmr.msra.gmra.mrb[6].mxu0 %vm450_vm2, %v717_v2 }
 0x264   : > { %v718_v4 = vpop.trf.xlu0 }
 0x265   : > { %2786 = vmatprep.mubr.msk.f32.mxu0 %vm450_vm2, %v718_v4 }
 0x268   : > { %v719_v6 = vpop.trf.xlu0 }
 0x269   : > { %2787 = vmatmul.mubr.msk.f32.gmra.mrb[8].mxu0 %vm450_vm2, %v719_v6 }
 0x26c   : > { %v720_v8 = vpop.trf.xlu0 }
 0x26d   : > { %2789 = vmatprep.mubr.msk.f32.mxu0 %vm450_vm2, %v720_v8 }
 0x270   : > { %v721_v10 = vpop.trf.xlu0 }
 0x271   : > { %2790 = vmatmul.mubr.msk.f32.gmra.mrb[10].mxu0 %vm450_vm2, %v721_v10 }
 0x274   : > { %v722_v14 = vpop.trf.xlu0 }
 0x275   : > { %2792 = vmatprep.mubr.msk.f32.mxu0 %vm450_vm2, %v722_v14  ;;  %v2660_v14 = vld [vmem:[%s3168_s22 + $0xd8] sm:$0xff] }
 0x278   : > { %v723_v16 = vpop.trf.xlu0 }
 0x279   : > { %2793 = vmatmul.mubr.msk.f32.gmra.mrb[12].mxu0 %vm450_vm2, %v723_v16  ;;  %v979_v16 = vpop.permute.xlu1 %978 }
 0x27c   : > { %v724_v18 = vpop.trf.xlu0 }
 0x27d   : > { %2795 = vmatprep.mubr.msk.f32.mxu0 %vm450_vm2, %v724_v18  ;;  %v984_v17 = vpop.permute.xlu1 %983 }
 0x280   : > { %v725_v20 = vpop.trf.xlu0 }
 0x281   : > { %2796 = vmatmul.mubr.msk.f32.gmra.mrb[14].mxu0 %vm450_vm2, %v725_v20  ;;  %v989_v18 = vpop.permute.xlu1 %988 }
 0x284   : > { %v726_v22 = vpop.trf.xlu0 }
 0x285   : > { %2798 = vmatprep.mubr.msk.f32.mxu0 %vm450_vm2, %v726_v22  ;;  %v994_v19 = vpop.permute.xlu1 %993 }
 0x288   : > { %v727_v24 = vpop.trf.xlu0 }
 0x289   : > { %2799 = vmatmul.mubr.msk.f32.gmra.mrb[16].mxu0 %vm450_vm2, %v727_v24  ;;  %v3315_v25 = vpop.permute.xlu1 %998 }
 0x28c   : > { %v728_v26 = vpop.trf.xlu0 }
 0x28d   : > { %2801 = vmatprep.mubr.msk.f32.mxu0 %vm450_vm2, %v728_v26 }
 0x290   : > { %v729_v28 = vpop.trf.xlu0 }
 0x291   : > { %2802 = vmatmul.mubr.msk.f32.gmra.mrb[18].mxu0 %vm450_vm2, %v729_v28 }
 0x294   : > { %v730_v30 = vpop.trf.xlu0 }
 0x295   : > { %2804 = vmatprep.mubr.msk.f32.mxu0 %vm450_vm2, %v730_v30 }
 0x298   : > { %v731_v32 = vpop.trf.xlu0 }
 0x299   : > { %2805 = vmatmul.mubr.msk.f32.gmra.mrb[20].mxu0 %vm450_vm2, %v731_v32 }
 0x29a   : > { %v1685_v34 = vpop.f32.mrb[12].mxu1 }
 0x29b   : > { %v1689_v35 = vmul.f32 %v3180_v12, %v1685_v34  ;;  %v2826_v36 = vpop.f32.mrb[13].mxu1 }
 0x29c   : > { %v3337_v36 = vrot.slane %v3328_v31, %v1059_v33 }
 0x29d   : > { %v1690_v37 = vsel %vm454_vm1, %v1689_v35, 0.0  ;;  %v3332_v35 = vpop.permute.xlu1 %1003 }
 0x29e   : > { %v1691_v38 = vrot.slane %v1690_v37, 4  ;;  %v1769_v39 = vpop.f32.mrb[14].mxu1  ;;  %vm1062_vm3 = vcmp.eq.f32.partialorder %v979_v16, %v3337_v36  ;;  %vm1063_vm4 = vcmp.eq.f32.partialorder %v984_v17, %v3337_v36  ;;  %vm1064_vm5 = vcmp.eq.f32.partialorder %v989_v18, %v3337_v36 }
 0x29f   : > { %v1773_v40 = vmul.f32 %v3187_v13, %v1769_v39  ;;  %v2831_v41 = vpop.f32.mrb[15].mxu1  ;;  %vm1065_vm6 = vcmp.eq.f32.partialorder %v994_v19, %v3337_v36  ;;  %vm1066_vm7 = vcmp.eq.f32.partialorder %v3315_v25, %v3337_v36  ;;  %vm1067_vm8 = vcmp.eq.f32.partialorder %v3332_v35, %v3337_v36 }
 0x2a0   : > { %v1692_v42 = vadd.f32 %v1691_v38, %v1690_v37 }
 0x2a1   : > { %v1774_v43 = vsel %vm454_vm1, %v1773_v40, 0.0 }
 0x2a2   : > { %v1693_v44 = vrot.slane %v1692_v42, 2  ;;  %v1775_v45 = vrot.slane %v1774_v43, 4  ;;  %v1855_v46 = vpop.f32.mrb[16].mxu1 }
 0x2a3   : > { %v2836_v47 = vpop.f32.mrb[17].mxu1 }
 0x2a4   : > { %v1694_v48 = vadd.f32 %v1693_v44, %v1692_v42  ;;  %v1776_v49 = vadd.f32 %v1775_v45, %v1774_v43  ;;  %v3340_v43 = vpop.permute.xlu1 %1008 }
 0x2a5   : > { %vm1068_vm9 = vcmp.eq.f32.partialorder %v3340_v43, %v3337_v36 }
 0x2a6   : > { %v1695_v52 = vrot.slane %v1694_v48, 1  ;;  %v1777_v63 = vrot.slane %v1776_v49, 2 }
 0x2a8   : > { %v1696_v2 = vadd.f32 %v1695_v52, %v1694_v48  ;;  %v1778_v3 = vadd.f32 %v1777_v63, %v1776_v49  ;;  %v3346_v49 = vpop.permute.xlu1 %1013 }
 0x2a9   : > { %vm1069_vm11 = vcmp.eq.f32.partialorder %v3346_v49, %v3337_v36 }
 0x2aa   : > { %v1781_v4 = vmax.f32 %v1696_v2, 1e-16  ;;  %v1779_v5 = vrot.slane %v1778_v3, 1 }
 0x2ac   : > { %2899 = vrsqrt.f32 %v1781_v4  ;;  %v1780_v13 = vadd.f32 %v1779_v5, %v1778_v3 }
 0x2ae   : > { %v1784_v6 = vmax.f32 %v1780_v13, 1e-16 }
 0x2b0   : > { %2901 = vrsqrt.f32 %v1784_v6 }
 0x2b6   : > { %v2900_v7 = vpop.eup %2899 }
 0x2b7   : > { %v1783_v8 = vmul.f32 0.71428573, %v2900_v7 }
 0x2b9   : > { %v1859_v9 = vmul.f32 %v3180_v12, %v1783_v8  ;;  %v3351_v8 = vpop.permute.xlu1 %1018 }
 0x2ba   : > { %v2902_v10 = vpop.eup %2901  ;;  %vm1070_vm13 = vcmp.eq.f32.partialorder %v3351_v8, %v3337_v36 }
 0x2bb   : > { %1861 = vxpose.xlu0.b32.start.end [1/1] (short) %v1859_v9, 128  ;;  %v1860_v11 = vmul.f32 %v2902_v10, %v1855_v46 }
 0x2bd   : > { %2837 = vmatprep.subr.msk.mxu0 %vm454_vm1, %v1860_v11  ;;  %2863 = vmatprep.subr.msk.mxu1 %vm454_vm1, %v1860_v11 }
 0x2be   : > { %2838 = vmatpush3.msk.msra.mxu0 %vm454_vm1, %v1860_v11  ;;  %2864 = vmatpush3.msk.msra.mxu1 %vm454_vm1, %v1860_v11 }
 0x2c0   : > { %v3313_v22 = vpop.permute.xlu0 %2184 }
 0x320   : > { %2194 = vperm.xlu0 %2894, %v2660_v14  }
 0x324   : > { %2204 = vperm.xlu0 %2894, %v2662_v15  }
 0x334   : > { %v2785_v12 = vpop.f32.mrb[6].mxu0 }
 0x335   : > { %v849_v20 = vpop.f32.mrb[7].mxu0 }
 0x336   : > { %v928_v21 = vpack.c.bf16 %v2785_v12, %v849_v20  ;;  %v3357_v20 = vpop.permute.xlu1 %1023 }
 0x337   : > { %vm1071_vm15 = vcmp.eq.f32.partialorder %v3357_v20, %v3337_v36 }
 0x338   : > { %v937_v24 = vmul.bf16 1069105081, %v928_v21 }
 0x33a   : > { %2903 = vpow.bf16 %v937_v24 }
 0x33b   : > { %v1877_v26 = vpop.trf.xlu0 }
 0x33c   : > { %2839 = vmatprep.mubr.msk.f32.mxu0 %vm450_vm2, %v1877_v26  ;;  %v2788_v28 = vpop.f32.mrb[8].mxu0 }
 0x33d   : > { %v859_v29 = vpop.f32.mrb[9].mxu0 }
 0x33e   : > { %v929_v30 = vpack.c.bf16 %v2788_v28, %v859_v29 }
 0x33f   : > { %v1878_v32 = vpop.trf.xlu0 }
 0x340   : > { %2840 = vmatmul.mubr.msk.f32.vlgmr.msra.gmra.mrb[22].mxu0 %vm450_vm2, %v1878_v32  ;;  %v940_v34 = vmul.bf16 1069105081, %v929_v30  ;;  %v1029_v30 = vpop.permute.xlu1 %1028 }
 0x341   : > { %vm1072_vm10 = vcmp.eq.f32.partialorder %v1029_v30, %v3337_v36 }
 0x342   : > { %2905 = vpow.bf16 %v940_v34 }
 0x343   : > { %v1879_v37 = vpop.trf.xlu0 }
 0x344   : > { %2842 = vmatprep.mubr.msk.f32.mxu0 %vm450_vm2, %v1879_v37  ;;  %v2791_v38 = vpop.f32.mrb[10].mxu0 }
 0x345   : > { %v2904_v39 = vpop.eup %2903  ;;  %v869_v40 = vpop.f32.mrb[11].mxu0 }
 0x346   : > { %v960_v41 = vunpack.c.l.bf16 %v2904_v39  ;;  %v930_v42 = vpack.c.bf16 %v2791_v38, %v869_v40  ;;  %v961_v45 = vunpack.c.h.bf16 %v2904_v39 }
 0x347   : > { %v1880_v44 = vpop.trf.xlu0 }
 0x348   : > { %2843 = vmatmul.mubr.msk.f32.gmra.mrb[24].mxu0 %vm450_vm2, %v1880_v44  ;;  %1126 = vadd.xlane.f32.xlu1 %v960_v41  ;;  %v943_v46 = vmul.bf16 1069105081, %v930_v42  ;;  %v1078_v47 = vsel %vm1062_vm3, %v960_v41, 0.0  ;;  %v1079_v2 = vsel %vm1063_vm4, %v961_v45, 0.0  ;;  %v3364_v41 = vpop.permute.xlu1 %1033  ;;  %vm1286_vm3 = vcmp.ne.f32.partialorder %v3328_v31, 0.0 }
 0x349   : > { %1128 = vadd.xlane.f32.xlu0 %v961_v45  ;;  %vm1288_vm4 = vcmask 1040384  }
 0x34a   : > { %2907 = vpow.bf16 %v943_v46 }
 0x34b   : > { %v1881_v48 = vpop.trf.xlu0 }
 0x34c   : > { %2845 = vmatprep.mubr.msk.f32.mxu0 %vm450_vm2, %v1881_v48  ;;  %1094 = vadd.xlane.f32.xlu1 %v1078_v47  ;;  %v2794_v52 = vpop.f32.mrb[12].mxu0 }
 0x34d   : > { %v2906_v63 = vpop.eup %2905  ;;  %v879_v3 = vpop.f32.mrb[13].mxu0 }
 0x34e   : > { %v931_v4 = vpack.c.bf16 %v2794_v52, %v879_v3  ;;  %v962_v5 = vunpack.c.l.bf16 %v2906_v63  ;;  %v963_v6 = vunpack.c.h.bf16 %v2906_v63  ;;  %v1039_v63 = vpop.permute.xlu1 %1038 }
 0x34f   : > { %v1882_v13 = vpop.trf.xlu0  ;;  %vm1074_vm14 = vcmp.eq.f32.partialorder %v1039_v63, %v3337_v36 }
 0x350   : > { %2846 = vmatmul.mubr.msk.f32.gmra.mrb[26].mxu0 %vm450_vm2, %v1882_v13  ;;  %1096 = vadd.xlane.f32.xlu1 %v1079_v2  ;;  %v1080_v7 = vsel %vm1064_vm5, %v962_v5, 0.0  ;;  %v1081_v9 = vsel %vm1065_vm6, %v963_v6, 0.0  ;;  %v946_v11 = vmul.bf16 1069105081, %v931_v4  ;;  %vm1270_vm5 = vcmp.ne.f32.partialorder %v3225_v50, 0.0 }
 0x351   : > { %1098 = vadd.xlane.f32.xlu0 %v1080_v7  ;;  %vm1315_vm6 = vcmask 7168  }
 0x352   : > { %2909 = vpow.bf16 %v946_v11  ;;  %v1044_v11 = vpop.permute.xlu1 %1043 }
 0x353   : > { %v1883_v10 = vpop.trf.xlu0  ;;  %vm1075_vm12 = vcmp.eq.f32.partialorder %v1044_v11, %v3337_v36 }
 0x354   : > { %2848 = vmatprep.mubr.msk.f32.mxu1 %vm450_vm2, %v1883_v10  ;;  %v2797_v14 = vpop.f32.mrb[14].mxu0  ;;  %1130 = vadd.xlane.f32.xlu1 %v962_v5 }
 0x355   : > { %v2908_v15 = vpop.eup %2907  ;;  %v889_v16 = vpop.f32.mrb[15].mxu0  ;;  %1100 = vadd.xlane.f32.xlu0 %v1081_v9 }
 0x356   : > { %v932_v17 = vpack.c.bf16 %v2797_v14, %v889_v16  ;;  %v964_v18 = vunpack.c.l.bf16 %v2908_v15  ;;  %v965_v28 = vunpack.c.h.bf16 %v2908_v15  ;;  %v1049_v49 = vpop.permute.xlu1 %1048 }
 0x357   : > { %v1884_v12 = vpop.trf.xlu0  ;;  %vm1076_vm0 = vcmp.eq.f32.partialorder %v1049_v49, %v3337_v36 }
 0x358   : > { %2849 = vmatmul.mubr.msk.f32.vlgmr.msra.gmra.mrb[18].mxu1 %vm450_vm2, %v1884_v12  ;;  %v949_v19 = vmul.bf16 1069105081, %v932_v17  ;;  %1132 = vadd.xlane.f32.xlu1 %v963_v6  ;;  %v1082_v21 = vsel %vm1066_vm7, %v964_v18, 0.0  ;;  %v1083_v37 = vsel %vm1067_vm8, %v965_v28, 0.0  ;;  %vm1271_vm7 = vcmp.ne.f32.partialorder %v3229_v51, 0.0 }
 0x359   : > { %1102 = vadd.xlane.f32.xlu0 %v1082_v21  ;;  %vm1272_vm8 = vcmp.ne.f32.partialorder %v3234_v53, 0.0 }
 0x35a   : > { %2911 = vpow.bf16 %v949_v19 }
 0x35b   : > { %v1885_v24 = vpop.trf.xlu0 }
 0x35c   : > { %2851 = vmatprep.mubr.msk.f32.mxu1 %vm450_vm2, %v1885_v24  ;;  %v2800_v26 = vpop.f32.mrb[16].mxu0  ;;  %1134 = vadd.xlane.f32.xlu1 %v964_v18 }
 0x35d   : > { %v899_v25 = vpop.f32.mrb[17].mxu0  ;;  %v2910_v38 = vpop.eup %2909 }
 0x35e   : > { %v933_v29 = vpack.c.bf16 %v2800_v26, %v899_v25  ;;  %v966_v45 = vunpack.c.l.bf16 %v2910_v38  ;;  %v967_v52 = vunpack.c.h.bf16 %v2910_v38  ;;  %v2664_v38 = vld [vmem:[%s3168_s22 + $0xf8] sm:$0xff] }
 0x35f   : > { %v1886_v32 = vpop.trf.xlu0 }
 0x360   : > { %v952_v34 = vmul.bf16 1069105081, %v933_v29  ;;  %2852 = vmatmul.mubr.msk.f32.gmra.mrb[20].mxu1 %vm450_vm2, %v1886_v32  ;;  %1136 = vadd.xlane.f32.xlu1 %v965_v28  ;;  %v1084_v9 = vsel %vm1068_vm9, %v966_v45, 0.0  ;;  %v1085_v15 = vsel %vm1069_vm11, %v967_v52, 0.0  ;;  %v1054_v28 = vpop.permute.xlu1 %1053  ;;  %vm1273_vm9 = vcmp.ne.f32.partialorder %v3238_v54, 0.0 }
 0x361   : > { %vm1077_vm1 = vcmp.eq.f32.partialorder %v1054_v28, %v3337_v36  ;;  %vm1275_vm11 = vcmp.ne.f32.partialorder %v3248_v57, 0.0 }
 0x362   : > { %2913 = vpow.bf16 %v952_v34 }
 0x363   : > { %v1887_v39 = vpop.trf.xlu0 }
 0x364   : > { %2854 = vmatprep.mubr.msk.f32.mxu1 %vm450_vm2, %v1887_v39  ;;  %v2803_v40 = vpop.f32.mrb[18].mxu0  ;;  %1104 = vadd.xlane.f32.xlu1 %v1083_v37  ;;  %v3391_v39 = vpop.permute.xlu1 %2139 }
 0x365   : > { %v3366_v42 = vpop.eup %2911  ;;  %v909_v44 = vpop.f32.mrb[19].mxu0 }
 0x366   : > { %v934_v35 = vpack.c.bf16 %v2803_v40, %v909_v44  ;;  %v969_v46 = vunpack.c.h.bf16 %v3366_v42  ;;  %v968_v18 = vunpack.c.l.bf16 %v3366_v42 }
 0x367   : > { %v1888_v47 = vpop.trf.xlu0 }
 0x368   : > { %v955_v48 = vmul.bf16 1069105081, %v934_v35  ;;  %2855 = vmatmul.mubr.msk.f32.gmra.mrb[22].mxu1 %vm450_vm2, %v1888_v47  ;;  %1144 = vadd.xlane.f32.xlu0 %v969_v46  ;;  %v1086_v26 = vsel %vm1070_vm13, %v968_v18, 0.0  ;;  %v1087_v30 = vsel %vm1071_vm15, %v969_v46, 0.0  ;;  %v3393_v40 = vpop.permute.xlu1 %2144  ;;  %vm1277_vm13 = vcmp.ne.f32.partialorder %v3258_v60, 0.0 }
 0x369   : > { %1138 = vadd.xlane.f32.xlu1 %v966_v45  ;;  %vm1278_vm15 = vcmp.ne.f32.partialorder %v3264_v62, 0.0 }
 0x36a   : > { %2915 = vpow.bf16 %v955_v48 }
 0x36b   : > { %v1889_v2 = vpop.trf.xlu0 }
 0x36c   : > { %2857 = vmatprep.mubr.msk.f32.mxu1 %vm450_vm2, %v1889_v2  ;;  %v2806_v3 = vpop.f32.mrb[20].mxu0  ;;  %v3395_v42 = vpop.permute.xlu1 %2154 }
 0x36d   : > { %v2914_v4 = vpop.eup %2913  ;;  %v919_v5 = vpop.f32.mrb[21].mxu0  ;;  %1140 = vadd.xlane.f32.xlu1 %v967_v52 }
 0x36e   : > { %v971_v13 = vunpack.c.h.bf16 %v2914_v4  ;;  %v935_v6 = vpack.c.bf16 %v2806_v3, %v919_v5  ;;  %v970_v7 = vunpack.c.l.bf16 %v2914_v4 }
 0x36f   : > { %v1890_v10 = vpop.trf.xlu0 }
 0x370   : > { %2858 = vmatmul.mubr.msk.f32.gmra.mrb[24].mxu1 %vm450_vm2, %v1890_v10  ;;  %1148 = vadd.xlane.f32.xlu0 %v971_v13  ;;  %v958_v43 = vmul.bf16 1069105081, %v935_v6  ;;  %v1088_v14 = vsel %vm1072_vm10, %v970_v7, 0.0  ;;  %v3397_v44 = vpop.permute.xlu1 %2159  ;;  %vm1274_vm10 = vcmp.ne.f32.partialorder %v3242_v55, 0.0 }
 0x371   : > { %1106 = vadd.xlane.f32.xlu1 %v1084_v9 }
 0x372   : > { %2917 = vpow.bf16 %v958_v43 }
 0x373   : > { %v1891_v16 = vpop.trf.xlu0 }
 0x374   : > { %2860 = vmatprep.mubr.msk.f32.mxu1 %vm450_vm2, %v1891_v16  ;;  %1114 = vadd.xlane.f32.xlu0 %v1088_v14 }
 0x375   : > { %v2916_v17 = vpop.eup %2915  ;;  %1108 = vadd.xlane.f32.xlu1 %v1085_v15 }
 0x376   : > { %v972_v12 = vunpack.c.l.bf16 %v2916_v17  ;;  %v973_v19 = vunpack.c.h.bf16 %v2916_v17 }
 0x377   : > { %v1892_v21 = vpop.trf.xlu0 }
 0x378   : > { %2861 = vmatmul.mubr.msk.f32.gmra.mrb[26].mxu1 %vm450_vm2, %v1892_v21  ;;  %1150 = vadd.xlane.f32.xlu0 %v972_v12  ;;  %v1091_v24 = vsel %vm1075_vm12, %v973_v19, 0.0  ;;  %v1090_v29 = vsel %vm1074_vm14, %v972_v12, 0.0  ;;  %vm1073_vm2 = vcmp.eq.f32.partialorder %v3364_v41, %v3337_v36  ;;  %v3400_v36 = vpop.permute.xlu1 %2169  ;;  %v1287_v41 = vsel %vm1286_vm3, 1.0, %v3098_v0 }
 0x379   : > { %1142 = vadd.xlane.f32.xlu1 %v968_v18  ;;  %v1089_v20 = vsel %vm1073_vm2, %v971_v13, 0.0  ;;  %v1289_v45 = vsel %vm1288_vm4, %v1287_v41, 0.0  ;;  %vm1276_vm12 = vcmp.ne.f32.partialorder %v3254_v59, 0.0  ;;  %vm1279_vm14 = vcmp.ne.f32.partialorder %v3268_v1, 0.0 }
 0x37c   : > { %1152 = vadd.xlane.f32.xlu0 %v973_v19  ;;  %v3404_v35 = vpop.permute.xlu1 %2179 }
 0x37d   : > { %v2918_v25 = vpop.eup %2917  ;;  %1110 = vadd.xlane.f32.xlu1 %v1086_v26 }
 0x37e   : > { %v974_v8 = vunpack.c.l.bf16 %v2918_v25  ;;  %v975_v32 = vunpack.c.h.bf16 %v2918_v25 }
 0x380   : > { %1118 = vadd.xlane.f32.xlu0 %v1090_v29  ;;  %v1093_v34 = vsel %vm1077_vm1, %v975_v32, 0.0  ;;  %v1092_v37 = vsel %vm1076_vm0, %v974_v8, 0.0  ;;  %v3406_v46 = vpop.permute.xlu1 %2189 }
 0x381   : > { %1112 = vadd.xlane.f32.xlu1 %v1087_v30 }
 0x384   : > { %1154 = vadd.xlane.f32.xlu0 %v974_v8  ;;  %v3408_v47 = vpop.permute.xlu1 %2199 }
 0x385   : > { %1146 = vadd.xlane.f32.xlu1 %v970_v7 }
 0x388   : > { %1156 = vadd.xlane.f32.xlu0 %v975_v32  ;;  %v3412_v52 = vpop.permute.xlu1 %2209 }
 0x389   : > { %1116 = vadd.xlane.f32.xlu1 %v1089_v20 }
 0x38d   : > { %1120 = vadd.xlane.f32.xlu1 %v1091_v24 }
 0x391   : > { %1124 = vadd.xlane.f32.xlu1 %v1093_v34 }
 0x39e   : > { %2214 = vperm.xlu0 %2894, %v2664_v38  }
 0x39f   : > { %v3410_v48 = vpop.permute.xlu0 %2194 }
 0x3a3   : > { %v3414_v31 = vpop.permute.xlu0 %2204 }
 0x3bd   : > { %1122 = vadd.xlane.f32.xlu0 %v1092_v37 }
 0x3c1   : > { %1290 = vadd.xlane.f32.xlu0 %v1289_v45 }
 0x3d5   : > { %v1127_v63 = vpop.xlane.xlu1 %1126 }
 0x3d6   : > { %v1158_v2 = vadd.f32 4.8954166e-07, %v1127_v63  ;;  %v1129_v3 = vpop.xlane.xlu0 %1128 }
 0x3d7   : > { %v1159_v4 = vadd.f32 4.8954166e-07, %v1129_v3 }
 0x3d8   : > { %2919 = vrcp.f32 %v1158_v2 }
 0x3d9   : > { %v1095_v5 = vpop.xlane.xlu1 %1094  ;;  %2921 = vrcp.f32 %v1159_v4 }
 0x3dd   : > { %v1097_v13 = vpop.xlane.xlu1 %1096 }
 0x3de   : > { %v1099_v16 = vpop.xlane.xlu0 %1098 }
 0x3e1   : > { %v1131_v6 = vpop.xlane.xlu1 %1130 }
 0x3e2   : > { %v2920_v7 = vpop.eup %2919  ;;  %v1160_v9 = vadd.f32 4.8954166e-07, %v1131_v6  ;;  %v1101_v19 = vpop.xlane.xlu0 %1100 }
 0x3e3   : > { %v2922_v10 = vpop.eup %2921  ;;  %v1190_v11 = vmul.f32 %v2920_v7, %v1095_v5 }
 0x3e4   : > { %2923 = vrcp.f32 %v1160_v9  ;;  %v1191_v43 = vmul.f32 %v2922_v10, %v1097_v13 }
 0x3e5   : > { %v1206_v14 = vadd.f32 1e-06, %v1190_v11  ;;  %v1133_v15 = vpop.xlane.xlu1 %1132 }
 0x3e6   : > { %v1161_v17 = vadd.f32 4.8954166e-07, %v1133_v15  ;;  %v1207_v18 = vadd.f32 1e-06, %v1191_v43  ;;  %v1103_v30 = vpop.xlane.xlu0 %1102 }
 0x3e7   : > { %2925 = vlog2.f32 %v1206_v14 }
 0x3e8   : > { %2927 = vrcp.f32 %v1161_v17 }
 0x3e9   : > { %2929 = vlog2.f32 %v1207_v18  ;;  %v1135_v49 = vpop.xlane.xlu1 %1134 }
 0x3ea   : > { %v1162_v12 = vadd.f32 4.8954166e-07, %v1135_v49 }
 0x3ec   : > { %2931 = vrcp.f32 %v1162_v12 }
 0x3ed   : > { %v1137_v21 = vpop.xlane.xlu1 %1136 }
 0x3ee   : > { %v2924_v24 = vpop.eup %2923  ;;  %v1163_v26 = vadd.f32 4.8954166e-07, %v1137_v21 }
 0x3ef   : > { %v1192_v28 = vmul.f32 %v2924_v24, %v1099_v16 }
 0x3f0   : > { %2933 = vrcp.f32 %v1163_v26 }
 0x3f1   : > { %v2926_v25 = vpop.eup %2925  ;;  %v1208_v29 = vadd.f32 1e-06, %v1192_v28  ;;  %v1105_v8 = vpop.xlane.xlu1 %1104 }
 0x3f2   : > { %v2928_v32 = vpop.eup %2927  ;;  %v1223_v34 = vmul.f32 0.6931472, %v2926_v25 }
 0x3f3   : > { %v2930_v37 = vpop.eup %2929  ;;  %2935 = vlog2.f32 %v1208_v29  ;;  %v1193_v20 = vmul.f32 %v2928_v32, %v1101_v19 }
 0x3f4   : > { %v1254_v38 = vsub.f32 0.0, %v1223_v34  ;;  %v1225_v41 = vmul.f32 0.6931472, %v2930_v37 }
 0x3f5   : > { %v1209_v45 = vadd.f32 1e-06, %v1193_v20  ;;  %v1145_v7 = vpop.xlane.xlu0 %1144 }
 0x3f6   : > { %v2932_v63 = vpop.eup %2931  ;;  %v1299_v2 = vsel %vm1270_vm5, %v1254_v38, 0.0  ;;  %v1255_v3 = vsub.f32 0.0, %v1225_v41  ;;  %v1139_v4 = vpop.xlane.xlu1 %1138  ;;  %v1167_v12 = vadd.f32 4.8954166e-07, %v1145_v7 }
 0x3f7   : > { %v1316_v5 = vsel %vm1315_vm6, %v1299_v2, 0.0  ;;  %2937 = vlog2.f32 %v1209_v45  ;;  %v1194_v13 = vmul.f32 %v2932_v63, %v1103_v30  ;;  %v1164_v6 = vadd.f32 4.8954166e-07, %v1139_v4 }
 0x3f8   : > { %v1300_v9 = vsel %vm1271_vm7, %v1255_v3, 0.0 }
 0x3f9   : > { %v1317_v50 = vsel %vm1315_vm6, %v1300_v9, 0.0  ;;  %v1210_v10 = vadd.f32 1e-06, %v1194_v13  ;;  %2939 = vrcp.f32 %v1164_v6 }
 0x3fa   : > { %v2934_v11 = vpop.eup %2933  ;;  %v1318_v43 = vadd.f32 %v1317_v50, %v1316_v5  ;;  %v1141_v14 = vpop.xlane.xlu1 %1140 }
 0x3fb   : > { %v1195_v51 = vmul.f32 %v2934_v11, %v1105_v8  ;;  %2941 = vlog2.f32 %v1210_v10  ;;  %v1165_v15 = vadd.f32 4.8954166e-07, %v1141_v14 }
 0x3fd   : > { %v2936_v16 = vpop.eup %2935  ;;  %v1211_v17 = vadd.f32 1e-06, %v1195_v51  ;;  %2943 = vrcp.f32 %v1165_v15  ;;  %v1149_v18 = vpop.xlane.xlu0 %1148 }
 0x3fe   : > { %v1227_v49 = vmul.f32 0.6931472, %v2936_v16  ;;  %v1107_v19 = vpop.xlane.xlu1 %1106  ;;  %v1169_v32 = vadd.f32 4.8954166e-07, %v1149_v18 }
 0x3ff   : > { %2945 = vlog2.f32 %v1211_v17 }
 0x400   : > { %v1256_v21 = vsub.f32 0.0, %v1227_v49  ;;  %2947 = vrcp.f32 %v1167_v12 }
 0x401   : > { %v2938_v24 = vpop.eup %2937  ;;  %v3421_v26 = vpop.xlane.xlu0 %1114  ;;  %2949 = vrcp.f32 %v1169_v32 }
 0x402   : > { %v1301_v28 = vsel %vm1272_vm8, %v1256_v21, 0.0  ;;  %v1229_v25 = vmul.f32 0.6931472, %v2938_v24  ;;  %v1109_v29 = vpop.xlane.xlu1 %1108 }
 0x403   : > { %v2940_v8 = vpop.eup %2939  ;;  %v1319_v30 = vsel %vm1315_vm6, %v1301_v28, 0.0 }
 0x404   : > { %v1320_v34 = vadd.f32 %v1319_v30, %v1318_v43  ;;  %v1257_v37 = vsub.f32 0.0, %v1229_v25  ;;  %v1196_v20 = vmul.f32 %v2940_v8, %v1107_v19 }
 0x405   : > { %v2942_v38 = vpop.eup %2941  ;;  %v1151_v53 = vpop.xlane.xlu0 %1150 }
 0x406   : > { %v1302_v41 = vsel %vm1273_vm9, %v1257_v37, 0.0  ;;  %v1231_v45 = vmul.f32 0.6931472, %v2942_v38  ;;  %v1212_v63 = vadd.f32 1e-06, %v1196_v20  ;;  %v1143_v2 = vpop.xlane.xlu1 %1142 }
 0x407   : > { %v2944_v3 = vpop.eup %2943  ;;  %v1321_v4 = vsel %vm1315_vm6, %v1302_v41, 0.0  ;;  %v1170_v5 = vadd.f32 4.8954166e-07, %v1151_v53  ;;  %v1166_v54 = vadd.f32 4.8954166e-07, %v1143_v2 }
 0x408   : > { %v1322_v13 = vadd.f32 %v1321_v4, %v1320_v34  ;;  %v1258_v6 = vsub.f32 0.0, %v1231_v45  ;;  %2951 = vlog2.f32 %v1212_v63  ;;  %v1197_v7 = vmul.f32 %v2944_v3, %v1109_v29 }
 0x409   : > { %v2946_v9 = vpop.eup %2945  ;;  %2953 = vrcp.f32 %v1170_v5  ;;  %v1153_v43 = vpop.xlane.xlu0 %1152 }
 0x40a   : > { %v1233_v50 = vmul.f32 0.6931472, %v2946_v9  ;;  %v1303_v10 = vsel %vm1274_vm10, %v1258_v6, 0.0  ;;  %v1213_v11 = vadd.f32 1e-06, %v1197_v7  ;;  %2955 = vrcp.f32 %v1166_v54  ;;  %v1111_v14 = vpop.xlane.xlu1 %1110  ;;  %v2948_v16 = vpop.eup %2947 }
 0x40b   : > { %v1323_v51 = vsel %vm1315_vm6, %v1303_v10, 0.0  ;;  %v1171_v15 = vadd.f32 4.8954166e-07, %v1153_v43  ;;  %v2950_v24 = vpop.eup %2949 }
 0x40c   : > { %v1259_v17 = vsub.f32 0.0, %v1233_v50  ;;  %v1324_v18 = vadd.f32 %v1323_v51, %v1322_v13  ;;  %2957 = vlog2.f32 %v1213_v11 }
 0x40d   : > { %2959 = vrcp.f32 %v1171_v15  ;;  %v1119_v53 = vpop.xlane.xlu0 %1118 }
 0x40e   : > { %v1304_v49 = vsel %vm1275_vm11, %v1259_v17, 0.0  ;;  %v1113_v12 = vpop.xlane.xlu1 %1112 }
 0x40f   : > { %v1325_v19 = vsel %vm1315_vm6, %v1304_v49, 0.0  ;;  %v1199_v55 = vmul.f32 %v2948_v16, %v1113_v12 }
 0x410   : > { %v1326_v21 = vadd.f32 %v1325_v19, %v1324_v18 }
 0x411   : > { %v1215_v28 = vadd.f32 1e-06, %v1199_v55  ;;  %v3449_v1 = vpop.xlane.xlu0 %1154 }
 0x412   : > { %v2952_v25 = vpop.eup %2951  ;;  %v1147_v29 = vpop.xlane.xlu1 %1146 }
 0x413   : > { %v2954_v8 = vpop.eup %2953  ;;  %v1235_v57 = vmul.f32 0.6931472, %v2952_v25  ;;  %v2841_v30 = vpop.f32.mrb[22].mxu0  ;;  %2961 = vlog2.f32 %v1215_v28  ;;  %v1168_v32 = vadd.f32 4.8954166e-07, %v1147_v29 }
 0x414   : > { %v2956_v34 = vpop.eup %2955  ;;  %v2010_v37 = vpop.f32.mrb[23].mxu0  ;;  %v1202_v63 = vmul.f32 %v2954_v8, %v1119_v53 }
 0x415   : > { %v1260_v20 = vsub.f32 0.0, %v1235_v57  ;;  %v1198_v38 = vmul.f32 %v2956_v34, %v1111_v14  ;;  %v2089_v41 = vpack.c.bf16 %v2841_v30, %v2010_v37  ;;  %2963 = vrcp.f32 %v1168_v32 }
 0x416   : > { %v2958_v45 = vpop.eup %2957  ;;  %v1117_v2 = vpop.xlane.xlu1 %1116  ;;  %v1218_v10 = vadd.f32 1e-06, %v1202_v63 }
 0x417   : > { %v1305_v3 = vsel %vm1276_vm12, %v1260_v20, 0.0  ;;  %v1237_v4 = vmul.f32 0.6931472, %v2958_v45  ;;  %v1214_v5 = vadd.f32 1e-06, %v1198_v38  ;;  %v1201_v54 = vmul.f32 %v2950_v24, %v1117_v2  ;;  %v2960_v13 = vpop.eup %2959 }
 0x418   : > { %v1327_v6 = vsel %vm1315_vm6, %v1305_v3, 0.0  ;;  %v2098_v7 = vmul.bf16 1069105081, %v2089_v41  ;;  %v3438_v24 = vld [vmem:[%s3325_s25 + $0x1] sm:$0x1] }
 0x419   : > { %v1328_v59 = vadd.f32 %v1327_v6, %v1326_v21  ;;  %v1261_v9 = vsub.f32 0.0, %v1237_v4  ;;  %2965 = vlog2.f32 %v1214_v5  ;;  %v1217_v50 = vadd.f32 1e-06, %v1201_v54 }
 0x41a   : > { %2967 = vpow.bf16 %v2098_v7  ;;  %v1121_v11 = vpop.xlane.xlu1 %1120  ;;  %v3444_v34 = vrot.slane %v3438_v24, %v1059_v33 }
 0x41b   : > { %v1306_v43 = vsel %vm1277_vm13, %v1261_v9, 0.0  ;;  %v2844_v14 = vpop.f32.mrb[24].mxu0  ;;  %v1203_v51 = vmul.f32 %v2960_v13, %v1121_v11  ;;  %2969 = vlog2.f32 %v1217_v50  ;;  %v1157_v9 = vpop.xlane.xlu0 %1156 }
 0x41c   : > { %v1329_v15 = vsel %vm1315_vm6, %v1306_v43, 0.0  ;;  %v2020_v16 = vpop.f32.mrb[25].mxu0  ;;  %2971 = vlog2.f32 %v1218_v10  ;;  %vm2224_vm0 = vcmp.eq.f32.partialorder %v3393_v40, %v3444_v34  ;;  %vm2223_vm1 = vcmp.eq.f32.partialorder %v3391_v39, %v3444_v34 }
 0x41d   : > { %v2962_v17 = vpop.eup %2961  ;;  %v1330_v60 = vadd.f32 %v1329_v15, %v1328_v59  ;;  %v2090_v18 = vpack.c.bf16 %v2844_v14, %v2020_v16  ;;  %v1219_v49 = vadd.f32 1e-06, %v1203_v51  ;;  %vm2225_vm2 = vcmp.eq.f32.partialorder %v3244_v56, %v3444_v34  ;;  %v3067_v51 = vld [vmem:[%s3168_s22 + $0x58] sm:$0xff] }
 0x41e   : > { %v1241_v12 = vmul.f32 0.6931472, %v2962_v17  ;;  %vm1281_vm3 = vcmp.ne.f32.partialorder %v3067_v51, 0.0  ;;  %vm2226_vm5 = vcmp.eq.f32.partialorder %v3395_v42, %v3444_v34  ;;  %v1173_v15 = vadd.f32 4.8954166e-07, %v1157_v9 }
 0x41f   : > { %v2964_v19 = vpop.eup %2963  ;;  %v2101_v55 = vmul.bf16 1069105081, %v2090_v18  ;;  %2973 = vlog2.f32 %v1219_v49  ;;  %v3068_v49 = vld [vmem:[%s3168_s22 + $0x50] sm:$0xff]  ;;  %vm2227_vm10 = vcmp.eq.f32.partialorder %v3397_v44, %v3444_v34  ;;  %vm2229_vm11 = vcmp.eq.f32.partialorder %v3400_v36, %v3444_v34  ;;  %v3478_v36 = vpop.permute.xlu0 %2214 }
 0x420   : > { %v1200_v21 = vmul.f32 %v2964_v19, %v3421_v26  ;;  %v1263_v28 = vsub.f32 0.0, %v1241_v12  ;;  %vm1280_vm7 = vcmp.ne.f32.partialorder %v3068_v49, 0.0  ;;  %v3069_v12 = vld [vmem:[%s3168_s22 + $0x60] sm:$0xff]  ;;  %vm2228_vm12 = vcmp.eq.f32.partialorder %v3251_v58, %v3444_v34 }
 0x421   : > { %2975 = vpow.bf16 %v2101_v55  ;;  %vm1282_vm8 = vcmp.ne.f32.partialorder %v3069_v12, 0.0  ;;  %vm2231_vm13 = vcmp.eq.f32.partialorder %v3404_v35, %v3444_v34 }
 0x422   : > { %v1216_v25 = vadd.f32 1e-06, %v1200_v21  ;;  %v1308_v38 = vsel %vm1279_vm14, %v1263_v28, 0.0  ;;  %v3070_v28 = vld [vmem:[%s3168_s22 + $0x68] sm:$0xff]  ;;  %vm2230_vm14 = vcmp.eq.f32.partialorder %v3260_v61, %v3444_v34 }
 0x423   : > { %v2966_v29 = vpop.eup %2965  ;;  %v2847_v8 = vpop.f32.mrb[26].mxu0  ;;  %v1333_v3 = vsel %vm1315_vm6, %v1308_v38, 0.0  ;;  %vm1283_vm9 = vcmp.ne.f32.partialorder %v3070_v28, 0.0 }
 0x424   : > { %v1239_v57 = vmul.f32 0.6931472, %v2966_v29  ;;  %2977 = vlog2.f32 %v1216_v25  ;;  %v2030_v30 = vpop.f32.mrb[27].mxu0 }
 0x425   : > { %v2968_v32 = vpop.eup %2967  ;;  %v2091_v26 = vpack.c.bf16 %v2847_v8, %v2030_v30 }
 0x426   : > { %v2970_v37 = vpop.eup %2969  ;;  %v1262_v20 = vsub.f32 0.0, %v1239_v57  ;;  %v2121_v53 = vunpack.c.l.bf16 %v2968_v32  ;;  %v2122_v41 = vunpack.c.h.bf16 %v2968_v32 }
 0x427   : > { %v2104_v45 = vmul.bf16 1069105081, %v2091_v26  ;;  %v2972_v63 = vpop.eup %2971  ;;  %v1245_v33 = vmul.f32 0.6931472, %v2970_v37 }
 0x428   : > { %v1307_v27 = vsel %vm1278_vm15, %v1262_v20, 0.0  ;;  %2287 = vadd.xlane.f32.xlu1 %v2121_v53  ;;  %v2240_v62 = vsel %vm2224_vm0, %v2122_v41, 0.0  ;;  %v2239_v4 = vsel %vm2223_vm1, %v2121_v53, 0.0  ;;  %v1247_v54 = vmul.f32 0.6931472, %v2972_v63 }
 0x429   : > { %v1331_v2 = vsel %vm1315_vm6, %v1307_v27, 0.0  ;;  %2979 = vpow.bf16 %v2104_v45  ;;  %2257 = vadd.xlane.f32.xlu0 %v2240_v62  ;;  %v2974_v5 = vpop.eup %2973  ;;  %v1265_v59 = vsub.f32 0.0, %v1245_v33  ;;  %v1172_v62 = vadd.f32 4.8954166e-07, %v3449_v1 }
 0x42a   : > { %v1332_v40 = vadd.f32 %v1331_v2, %v1330_v60  ;;  %v1249_v50 = vmul.f32 0.6931472, %v2974_v5  ;;  %v1266_v16 = vsub.f32 0.0, %v1247_v54  ;;  %v1125_v54 = vpop.xlane.xlu1 %1124  ;;  %vm2233_vm15 = vcmp.eq.f32.partialorder %v3406_v46, %v3444_v34 }
 0x42b   : > { %v2850_v13 = vpop.f32.mrb[18].mxu1  ;;  %v1310_v56 = vsel %vm1281_vm3, %v1265_v59, 0.0  ;;  %vm2234_vm0 = vcmp.eq.f32.partialorder %v3410_v48, %v3444_v34  ;;  %vm2232_vm1 = vcmp.eq.f32.partialorder %v3313_v22, %v3444_v34  ;;  %vm2236_vm3 = vcmp.eq.f32.partialorder %v3414_v31, %v3444_v34 }
 0x42c   : > { %v2976_v6 = vpop.eup %2975  ;;  %v1334_v7 = vadd.f32 %v1333_v3, %v1332_v40  ;;  %2289 = vadd.xlane.f32.xlu1 %v2122_v41  ;;  %v2040_v39 = vpop.f32.mrb[19].mxu1  ;;  %v1267_v21 = vsub.f32 0.0, %v1249_v50  ;;  %v1311_v42 = vsel %vm1282_vm8, %v1266_v16, 0.0  ;;  %v1337_v30 = vsel %vm1315_vm6, %v1310_v56, 0.0 }
 0x42d   : > { %v2092_v10 = vpack.c.bf16 %v2850_v13, %v2040_v39  ;;  %v2123_v11 = vunpack.c.l.bf16 %v2976_v6  ;;  %v2124_v43 = vunpack.c.h.bf16 %v2976_v6  ;;  %v1339_v53 = vsel %vm1315_vm6, %v1311_v42, 0.0 }
 0x42e   : > { %v2978_v14 = vpop.eup %2977  ;;  %v1312_v37 = vsel %vm1283_vm9, %v1267_v21, 0.0  ;;  %vm2238_vm8 = vcmp.eq.f32.partialorder %v3478_v36, %v3444_v34  ;;  %vm2237_vm9 = vcmp.eq.f32.partialorder %v3412_v52, %v3444_v34 }
 0x42f   : > { %v1243_v17 = vmul.f32 0.6931472, %v2978_v14  ;;  %v2107_v60 = vmul.bf16 1069105081, %v2092_v10  ;;  %v2241_v18 = vsel %vm2225_vm2, %v2123_v11, 0.0  ;;  %v2242_v19 = vsel %vm2226_vm5, %v2124_v43, 0.0 }
 0x430   : > { %2255 = vadd.xlane.f32.xlu1 %v2239_v4  ;;  %2259 = vadd.xlane.f32.xlu0 %v2241_v18  ;;  %v1341_v27 = vsel %vm1315_vm6, %v1312_v37, 0.0  ;;  %vm2235_vm2 = vcmp.eq.f32.partialorder %v3408_v47, %v3444_v34 }
 0x431   : > { %v1264_v55 = vsub.f32 0.0, %v1243_v17  ;;  %2981 = vpow.bf16 %v2107_v60 }
 0x432   : > { %2983 = vrcp.f32 %v1173_v15 }
 0x433   : > { %v1309_v25 = vsel %vm1280_vm7, %v1264_v55, 0.0  ;;  %v2853_v29 = vpop.f32.mrb[20].mxu1 }
 0x434   : > { %v2980_v8 = vpop.eup %2979  ;;  %v1335_v57 = vsel %vm1315_vm6, %v1309_v25, 0.0  ;;  %2291 = vadd.xlane.f32.xlu1 %v2123_v11  ;;  %v2050_v32 = vpop.f32.mrb[21].mxu1  ;;  %2261 = vadd.xlane.f32.xlu0 %v2242_v19 }
 0x435   : > { %v1336_v26 = vadd.f32 %v1335_v57, %v1334_v7  ;;  %v2093_v20 = vpack.c.bf16 %v2853_v29, %v2050_v32  ;;  %v2125_v38 = vunpack.c.l.bf16 %v2980_v8  ;;  %v2126_v2 = vunpack.c.h.bf16 %v2980_v8 }
 0x437   : > { %v1338_v41 = vadd.f32 %v1337_v30, %v1336_v26  ;;  %v2110_v45 = vmul.bf16 1069105081, %v2093_v20  ;;  %v2243_v63 = vsel %vm2227_vm10, %v2125_v38, 0.0  ;;  %v2244_v50 = vsel %vm2228_vm12, %v2126_v2, 0.0 }
 0x438   : > { %2293 = vadd.xlane.f32.xlu1 %v2124_v43  ;;  %2295 = vadd.xlane.f32.xlu0 %v2125_v38  ;;  %vm2447_vm10 = vcmp.ne.f32.partialorder %v3438_v24, 0.0 }
 0x439   : > { %2985 = vpow.bf16 %v2110_v45  ;;  %v1340_v33 = vadd.f32 %v1339_v53, %v1338_v41 }
 0x43a   : > { %2987 = vrcp.f32 %v1172_v62  ;;  %v3071_v62 = vld [vmem:[%s3168_s22 + $0x70] sm:$0xff] }
 0x43b   : > { %v2856_v3 = vpop.f32.mrb[22].mxu1  ;;  %v3470_v4 = vadd.f32 %v1341_v27, %v1340_v33  ;;  %vm1284_vm5 = vcmp.ne.f32.partialorder %v3071_v62, 0.0 }
 0x43c   : > { %v2982_v5 = vpop.eup %2981  ;;  %2297 = vadd.xlane.f32.xlu1 %v2126_v2  ;;  %v2060_v44 = vpop.f32.mrb[23].mxu1  ;;  %2263 = vadd.xlane.f32.xlu0 %v2243_v63  ;;  %v3072_v2 = vld [vmem:[%s3168_s22 + $0x78] sm:$0xff] }
 0x43d   : > { %v2984_v40 = vpop.eup %2983  ;;  %v2094_v13 = vpack.c.bf16 %v2856_v3, %v2060_v44  ;;  %v2127_v6 = vunpack.c.l.bf16 %v2982_v5  ;;  %v2128_v7 = vunpack.c.h.bf16 %v2982_v5  ;;  %vm1285_vm7 = vcmp.ne.f32.partialorder %v3072_v2, 0.0 }
 0x43e   : > { %v1205_v1 = vmul.f32 %v2984_v40, %v1125_v54 }
 0x43f   : > { %v2113_v59 = vmul.bf16 1069105081, %v2094_v13  ;;  %v2245_v39 = vsel %vm2229_vm11, %v2127_v6, 0.0  ;;  %v2246_v12 = vsel %vm2230_vm14, %v2128_v7, 0.0 }
 0x440   : > { %2299 = vadd.xlane.f32.xlu1 %v2127_v6  ;;  %2301 = vadd.xlane.f32.xlu0 %v2128_v7  ;;  %v1221_v11 = vadd.f32 1e-06, %v1205_v1  ;;  %v3073_v7 = vld [vmem:[%s3325_s25] sm:$0x1] }
 0x441   : > { %2989 = vpow.bf16 %v2113_v59  ;;  %v1361_v59 = vsel %vm1288_vm4, %v3073_v7, 0.0 }
 0x442   : > { %2991 = vlog2.f32 %v1221_v11 }
 0x443   : > { %v2859_v9 = vpop.f32.mrb[24].mxu1 }
 0x444   : > { %v2986_v10 = vpop.eup %2985  ;;  %v2070_v43 = vpop.f32.mrb[25].mxu1  ;;  %2265 = vadd.xlane.f32.xlu0 %v2244_v50  ;;  %v2448_v50 = vsel %vm2447_vm10, 1.0, %v3098_v0 }
 0x445   : > { %v2095_v14 = vpack.c.bf16 %v2859_v9, %v2070_v43  ;;  %v2129_v51 = vunpack.c.l.bf16 %v2986_v10  ;;  %v2988_v17 = vpop.eup %2987  ;;  %v2130_v58 = vunpack.c.h.bf16 %v2986_v10  ;;  %v2520_v10 = vsel %vm1288_vm4, %v3438_v24, 0.0 }
 0x447   : > { %v2116_v15 = vmul.bf16 1069105081, %v2095_v14  ;;  %2303 = vadd.xlane.f32.xlu1 %v2129_v51  ;;  %v2247_v16 = vsel %vm2231_vm13, %v2129_v51, 0.0  ;;  %v2248_v32 = vsel %vm2232_vm1, %v2130_v58, 0.0 }
 0x448   : > { %2267 = vadd.xlane.f32.xlu0 %v2245_v39 }
 0x449   : > { %2993 = vpow.bf16 %v2116_v15 }
 0x44a   : > { %v1123_v60 = vpop.xlane.xlu0 %1122 }
 0x44b   : > { %v2862_v18 = vpop.f32.mrb[26].mxu1  ;;  %2305 = vadd.xlane.f32.xlu1 %v2130_v58  ;;  %v1204_v49 = vmul.f32 %v2988_v17, %v1123_v60 }
 0x44c   : > { %v2990_v19 = vpop.eup %2989  ;;  %v2080_v35 = vpop.f32.mrb[27].mxu1  ;;  %2269 = vadd.xlane.f32.xlu0 %v2246_v12 }
 0x44d   : > { %v1220_v55 = vadd.f32 1e-06, %v1204_v49  ;;  %v2096_v56 = vpack.c.bf16 %v2862_v18, %v2080_v35  ;;  %v2131_v21 = vunpack.c.l.bf16 %v2990_v19  ;;  %v2132_v28 = vunpack.c.h.bf16 %v2990_v19  ;;  %v2992_v57 = vpop.eup %2991 }
 0x44e   : > { %v1291_v29 = vpop.xlane.xlu0 %1290  ;;  %v1253_v20 = vmul.f32 0.6931472, %v2992_v57 }
 0x44f   : > { %2995 = vlog2.f32 %v1220_v55  ;;  %v2119_v61 = vmul.bf16 1069105081, %v2096_v56  ;;  %2307 = vadd.xlane.f32.xlu1 %v2131_v21  ;;  %v2250_v42 = vsel %vm2234_vm0, %v2132_v28, 0.0  ;;  %v2249_v25 = vsel %vm2233_vm15, %v2131_v21, 0.0 }
 0x450   : > { %2271 = vadd.xlane.f32.xlu0 %v2247_v16  ;;  %v1292_v8 = vrot.slane %v1291_v29, 4  ;;  %v1269_v63 = vsub.f32 0.0, %v1253_v20 }
 0x451   : > { %2997 = vpow.bf16 %v2119_v61 }
 0x452   : > { %v1293_v30 = vadd.f32 %v1292_v8, %v1291_v29  ;;  %v1314_v40 = vsel %vm1285_vm7, %v1269_v63, 0.0 }
 0x453   : > { %2309 = vadd.xlane.f32.xlu1 %v2132_v28  ;;  %v1345_v39 = vsel %vm1315_vm6, %v1314_v40, 0.0 }
 0x454   : > { %v2994_v46 = vpop.eup %2993  ;;  %2273 = vadd.xlane.f32.xlu0 %v2248_v32  ;;  %v1294_v26 = vrot.slane %v1293_v30, 2 }
 0x455   : > { %v2133_v48 = vunpack.c.l.bf16 %v2994_v46  ;;  %v2134_v37 = vunpack.c.h.bf16 %v2994_v46 }
 0x456   : > { %v1295_v38 = vadd.f32 %v1294_v26, %v1293_v30 }
 0x457   : > { %2311 = vadd.xlane.f32.xlu1 %v2133_v48  ;;  %v2252_v22 = vsel %vm2236_vm3, %v2134_v37, 0.0  ;;  %v2251_v53 = vsel %vm2235_vm2, %v2133_v48, 0.0 }
 0x458   : > { %2277 = vadd.xlane.f32.xlu0 %v2250_v42  ;;  %v1296_v41 = vrot.slane %v1295_v38, 1 }
 0x459   : > { %v2996_v45 = vpop.eup %2995 }
 0x45a   : > { %v1251_v27 = vmul.f32 0.6931472, %v2996_v45  ;;  %v1297_v33 = vadd.f32 %v1296_v41, %v1295_v38  ;;  %v3074_v45 = vld [vmem:[%s3168_s22 + $0x80] sm:$0xff] }
 0x45b   : > { %2313 = vadd.xlane.f32.xlu1 %v2134_v37 }
 0x45c   : > { %v2998_v47 = vpop.eup %2997  ;;  %v1268_v3 = vsub.f32 0.0, %v1251_v27  ;;  %2281 = vadd.xlane.f32.xlu0 %v2252_v22  ;;  %2865 = vpush %v1297_v33 }
 0x45d   : > { %v2135_v31 = vunpack.c.l.bf16 %v2998_v47  ;;  %v2136_v5 = vunpack.c.h.bf16 %v2998_v47 }
 0x45e   : > { %v1313_v44 = vsel %vm1284_vm5, %v1268_v3, 0.0  ;;  %v3075_v3 = vld [vmem:[%s3168_s22 + $0x88] sm:$0xff] }
 0x45f   : > { %2315 = vadd.xlane.f32.xlu1 %v2135_v31  ;;  %v2254_v54 = vsel %vm2238_vm8, %v2136_v5, 0.0  ;;  %v1343_v13 = vsel %vm1315_vm6, %v1313_v44, 0.0  ;;  %v2253_v9 = vsel %vm2237_vm9, %v2135_v31, 0.0  ;;  %vm2432_vm11 = vcmp.ne.f32.partialorder %v3075_v3, 0.0 }
 0x460   : > { %2285 = vadd.xlane.f32.xlu0 %v2254_v54  ;;  %v1344_v6 = vadd.f32 %v1343_v13, %v3470_v4  ;;  %v2449_v4 = vsel %vm1288_vm4, %v2448_v50, 0.0  ;;  %vm2431_vm4 = vcmp.ne.f32.partialorder %v3074_v45, 0.0 }
 0x462   : > { %v1346_v1 = vadd.f32 %v1345_v39, %v1344_v6 }
 0x463   : > { %2317 = vadd.xlane.f32.xlu1 %v2136_v5 }
 0x464   : > { %1362 = vadd.xlane.f32.xlu0 %v1361_v59 }
 0x467   : > { %2275 = vadd.xlane.f32.xlu1 %v2249_v25 }
 0x46b   : > { %2279 = vadd.xlane.f32.xlu1 %v2251_v53 }
 0x46f   : > { %2283 = vadd.xlane.f32.xlu1 %v2253_v9 }
 0x473   : > { %1347 = vadd.xlane.f32.xlu1 %v1346_v1 }
 0x477   : > { %2450 = vadd.xlane.f32.xlu1 %v2449_v4 }
 0x47b   : > { %2521 = vadd.xlane.f32.xlu1 %v2520_v10 }
 0x48d   : > { %s2866_s26 = spop %2865 }
 0x48e   : > { %s1356_s28 = smax.f32 %s3101_s27, %s2866_s26 }
 0x4b5   : > { %v2288_v11 = vpop.xlane.xlu1 %2287 }
 0x4b6   : > { %v2319_v43 = vadd.f32 4.8954166e-07, %v2288_v11  ;;  %v2258_v14 = vpop.xlane.xlu0 %2257 }
 0x4b8   : > { %2999 = vrcp.f32 %v2319_v43 }
 0x4b9   : > { %v2290_v51 = vpop.xlane.xlu1 %2289 }
 0x4ba   : > { %v2320_v52 = vadd.f32 4.8954166e-07, %v2290_v51 }
 0x4bc   : > { %3001 = vrcp.f32 %v2320_v52 }
 0x4bd   : > { %v2256_v34 = vpop.xlane.xlu1 %2255  ;;  %v2260_v36 = vpop.xlane.xlu0 %2259 }
 0x4c1   : > { %v2292_v15 = vpop.xlane.xlu1 %2291  ;;  %v2262_v16 = vpop.xlane.xlu0 %2261 }
 0x4c2   : > { %v3000_v0 = vpop.eup %2999  ;;  %v2321_v17 = vadd.f32 4.8954166e-07, %v2292_v15 }
 0x4c3   : > { %v2351_v58 = vmul.f32 %v3000_v0, %v2256_v34 }
 0x4c4   : > { %3003 = vrcp.f32 %v2321_v17 }
 0x4c5   : > { %v2367_v60 = vadd.f32 1e-06, %v2351_v58  ;;  %v2294_v18 = vpop.xlane.xlu1 %2293  ;;  %v2296_v49 = vpop.xlane.xlu0 %2295 }
 0x4c6   : > { %v3002_v24 = vpop.eup %3001  ;;  %v2322_v12 = vadd.f32 4.8954166e-07, %v2294_v18  ;;  %v2323_v19 = vadd.f32 4.8954166e-07, %v2296_v49 }
 0x4c7   : > { %v2352_v35 = vmul.f32 %v3002_v24, %v2258_v14  ;;  %3005 = vlog2.f32 %v2367_v60 }
 0x4c8   : > { %3007 = vrcp.f32 %v2322_v12  ;;  %v3077_v12 = vld [vmem:[%s3168_s22 + $0x98] sm:$0xff] }
 0x4c9   : > { %v2368_v55 = vadd.f32 1e-06, %v2352_v35  ;;  %3009 = vrcp.f32 %v2323_v19  ;;  %v2298_v56 = vpop.xlane.xlu1 %2297  ;;  %v2264_v21 = vpop.xlane.xlu0 %2263  ;;  %vm2434_vm13 = vcmp.ne.f32.partialorder %v3077_v12, 0.0 }
 0x4ca   : > { %v2324_v28 = vadd.f32 4.8954166e-07, %v2298_v56 }
 0x4cb   : > { %3011 = vlog2.f32 %v2368_v55  ;;  %v3078_v55 = vld [vmem:[%s3168_s22 + $0xa0] sm:$0xff] }
 0x4cc   : > { %3013 = vrcp.f32 %v2324_v28  ;;  %vm2435_vm14 = vcmp.ne.f32.partialorder %v3078_v55, 0.0 }
 0x4cd   : > { %v2300_v61 = vpop.xlane.xlu1 %2299  ;;  %v2302_v42 = vpop.xlane.xlu0 %2301 }
 0x4ce   : > { %v3004_v25 = vpop.eup %3003  ;;  %v2325_v29 = vadd.f32 4.8954166e-07, %v2300_v61  ;;  %v2326_v8 = vadd.f32 4.8954166e-07, %v2302_v42 }
 0x4cf   : > { %v2353_v57 = vmul.f32 %v3004_v25, %v2260_v36  ;;  %v3076_v36 = vld [vmem:[%s3168_s22 + $0x90] sm:$0xff] }
 0x4d0   : > { %3015 = vrcp.f32 %v2325_v29  ;;  %vm2433_vm12 = vcmp.ne.f32.partialorder %v3076_v36, 0.0 }
 0x4d1   : > { %v3006_v30 = vpop.eup %3005  ;;  %v2369_v32 = vadd.f32 1e-06, %v2353_v57  ;;  %3017 = vrcp.f32 %v2326_v8  ;;  %v2266_v46 = vpop.xlane.xlu0 %2265 }
 0x4d2   : > { %v3008_v26 = vpop.eup %3007  ;;  %v2384_v48 = vmul.f32 0.6931472, %v3006_v30 }
 0x4d3   : > { %v3010_v37 = vpop.eup %3009  ;;  %3019 = vlog2.f32 %v2369_v32  ;;  %v2354_v20 = vmul.f32 %v3008_v26, %v2262_v16  ;;  %v3079_v26 = vld [vmem:[%s3168_s22 + $0xa8] sm:$0xff] }
 0x4d4   : > { %v2415_v38 = vsub.f32 0.0, %v2384_v48  ;;  %v2355_v22 = vmul.f32 %v3010_v37, %v2264_v21  ;;  %v2304_v53 = vpop.xlane.xlu1 %2303  ;;  %vm2436_vm15 = vcmp.ne.f32.partialorder %v3079_v26, 0.0 }
 0x4d5   : > { %v3012_v41 = vpop.eup %3011  ;;  %v2370_v63 = vadd.f32 1e-06, %v2354_v20  ;;  %v2327_v27 = vadd.f32 4.8954166e-07, %v2304_v53  ;;  %v2268_v33 = vpop.xlane.xlu0 %2267 }
 0x4d6   : > { %v3014_v62 = vpop.eup %3013  ;;  %v2386_v2 = vmul.f32 0.6931472, %v3012_v41  ;;  %v2371_v47 = vadd.f32 1e-06, %v2355_v22  ;;  %v2459_v44 = vsel %vm2431_vm4, %v2415_v38, 0.0 }
 0x4d7   : > { %3021 = vlog2.f32 %v2370_v63  ;;  %v2356_v31 = vmul.f32 %v3014_v62, %v2266_v46  ;;  %v2475_v1 = vsel %vm1315_vm6, %v2459_v44, 0.0 }
 0x4d8   : > { %v2416_v5 = vsub.f32 0.0, %v2386_v2  ;;  %3023 = vlog2.f32 %v2371_v47  ;;  %v2306_v40 = vpop.xlane.xlu1 %2305 }
 0x4d9   : > { %v2372_v54 = vadd.f32 1e-06, %v2356_v31  ;;  %3025 = vrcp.f32 %v2327_v27  ;;  %v2328_v13 = vadd.f32 4.8954166e-07, %v2306_v40  ;;  %v2270_v6 = vpop.xlane.xlu0 %2269 }
 0x4da   : > { %v3016_v7 = vpop.eup %3015  ;;  %v2460_v59 = vsel %vm2432_vm11, %v2416_v5, 0.0  ;;  %v3080_v5 = vld [vmem:[%s3168_s22 + $0xb0] sm:$0xff] }
 0x4db   : > { %v3018_v39 = vpop.eup %3017  ;;  %v2476_v9 = vsel %vm1315_vm6, %v2460_v59, 0.0  ;;  %3027 = vlog2.f32 %v2372_v54  ;;  %v2357_v50 = vmul.f32 %v3016_v7, %v2268_v33  ;;  %vm2437_vm0 = vcmp.ne.f32.partialorder %v3080_v5, 0.0  ;;  %v3081_v54 = vld [vmem:[%s3168_s22 + $0xb8] sm:$0xff] }
 0x4dc   : > { %v2477_v4 = vadd.f32 %v2476_v9, %v2475_v1  ;;  %3029 = vrcp.f32 %v2328_v13  ;;  %v2358_v10 = vmul.f32 %v3018_v39, %v2270_v6  ;;  %v2308_v11 = vpop.xlane.xlu1 %2307  ;;  %vm2438_vm1 = vcmp.ne.f32.partialorder %v3081_v54, 0.0 }
 0x4dd   : > { %v3020_v43 = vpop.eup %3019  ;;  %v2373_v14 = vadd.f32 1e-06, %v2357_v50  ;;  %v2272_v51 = vpop.xlane.xlu0 %2271  ;;  %v2329_v29 = vadd.f32 4.8954166e-07, %v2308_v11 }
 0x4de   : > { %v2388_v52 = vmul.f32 0.6931472, %v3020_v43  ;;  %v2374_v34 = vadd.f32 1e-06, %v2358_v10 }
 0x4df   : > { %3031 = vlog2.f32 %v2373_v14 }
 0x4e0   : > { %v2417_v15 = vsub.f32 0.0, %v2388_v52  ;;  %3033 = vlog2.f32 %v2374_v34  ;;  %v2310_v16 = vpop.xlane.xlu1 %2309 }
 0x4e1   : > { %v3022_v0 = vpop.eup %3021  ;;  %v2330_v17 = vadd.f32 4.8954166e-07, %v2310_v16  ;;  %v2274_v58 = vpop.xlane.xlu0 %2273 }
 0x4e2   : > { %v3024_v60 = vpop.eup %3023  ;;  %v2390_v18 = vmul.f32 0.6931472, %v3022_v0  ;;  %v2461_v49 = vsel %vm2433_vm12, %v2417_v15, 0.0 }
 0x4e3   : > { %v3026_v24 = vpop.eup %3025  ;;  %v2478_v19 = vsel %vm1315_vm6, %v2461_v49, 0.0  ;;  %v2392_v35 = vmul.f32 0.6931472, %v3024_v60  ;;  %3035 = vrcp.f32 %v2330_v17 }
 0x4e4   : > { %v2418_v56 = vsub.f32 0.0, %v2390_v18  ;;  %v2479_v21 = vadd.f32 %v2478_v19, %v2477_v4  ;;  %v2359_v28 = vmul.f32 %v3026_v24, %v2272_v51  ;;  %v2312_v61 = vpop.xlane.xlu1 %2311  ;;  %3037 = vrcp.f32 %v2329_v29 }
 0x4e5   : > { %v3028_v42 = vpop.eup %3027  ;;  %v2419_v25 = vsub.f32 0.0, %v2392_v35  ;;  %v2278_v8 = vpop.xlane.xlu0 %2277  ;;  %v2331_v27 = vadd.f32 4.8954166e-07, %v2312_v61 }
 0x4e6   : > { %v3030_v57 = vpop.eup %3029  ;;  %v2462_v30 = vsel %vm2434_vm13, %v2418_v56, 0.0  ;;  %v2394_v32 = vmul.f32 0.6931472, %v3028_v42  ;;  %v2375_v46 = vadd.f32 1e-06, %v2359_v28 }
 0x4e7   : > { %v2480_v48 = vsel %vm1315_vm6, %v2462_v30, 0.0  ;;  %v2463_v37 = vsel %vm2435_vm14, %v2419_v25, 0.0  ;;  %v2360_v20 = vmul.f32 %v3030_v57, %v2274_v58  ;;  %v3082_v57 = vld [vmem:[%s3168_s22 + $0xc0] sm:$0xff] }
 0x4e8   : > { %v2481_v38 = vadd.f32 %v2480_v48, %v2479_v21  ;;  %v2482_v22 = vsel %vm1315_vm6, %v2463_v37, 0.0  ;;  %v2420_v53 = vsub.f32 0.0, %v2394_v32  ;;  %v2314_v41 = vpop.xlane.xlu1 %2313  ;;  %3039 = vlog2.f32 %v2375_v46  ;;  %v3083_v37 = vld [vmem:[%s3168_s22 + $0xc8] sm:$0xff] }
 0x4e9   : > { %v3032_v45 = vpop.eup %3031  ;;  %v2376_v63 = vadd.f32 1e-06, %v2360_v20  ;;  %v2332_v33 = vadd.f32 4.8954166e-07, %v2314_v41  ;;  %v2282_v31 = vpop.xlane.xlu0 %2281  ;;  %vm2439_vm2 = vcmp.ne.f32.partialorder %v3082_v57, 0.0  ;;  %v1357_v48 = vstv %s1356_s28  ;;  %v3089_v57 = vld [vmem:[%s3168_s22 + $0xf8] sm:$0xff] }
 0x4ea   : > { %v3034_v62 = vpop.eup %3033  ;;  %v2483_v2 = vadd.f32 %v2482_v22, %v2481_v38  ;;  %v2464_v47 = vsel %vm2436_vm15, %v2420_v53, 0.0  ;;  %v2396_v3 = vmul.f32 0.6931472, %v3032_v45  ;;  %vm2440_vm3 = vcmp.ne.f32.partialorder %v3083_v37, 0.0 }
 0x4eb   : > { %v2484_v44 = vsel %vm1315_vm6, %v2464_v47, 0.0  ;;  %v2398_v40 = vmul.f32 0.6931472, %v3034_v62  ;;  %3041 = vlog2.f32 %v2376_v63  ;;  %vm2446_vm4 = vcmp.ne.f32.partialorder %v3089_v57, 0.0 }
 0x4ec   : > { %v2485_v13 = vadd.f32 %v2484_v44, %v2483_v2  ;;  %v2421_v6 = vsub.f32 0.0, %v2396_v3  ;;  %3043 = vrcp.f32 %v2332_v33  ;;  %v2316_v7 = vpop.xlane.xlu1 %2315 }
 0x4ed   : > { %v3036_v59 = vpop.eup %3035  ;;  %v2422_v39 = vsub.f32 0.0, %v2398_v40  ;;  %v2333_v1 = vadd.f32 4.8954166e-07, %v2316_v7  ;;  %3045 = vrcp.f32 %v2331_v27  ;;  %v2286_v51 = vpop.xlane.xlu0 %2285 }
 0x4ee   : > { %v2465_v9 = vsel %vm2437_vm0, %v2421_v6, 0.0  ;;  %v2362_v50 = vmul.f32 %v3036_v59, %v2278_v8  ;;  %v3038_v15 = vpop.eup %3037  ;;  %v3085_v6 = vld [vmem:[%s3168_s22 + $0xd8] sm:$0xff] }
 0x4ef   : > { %v2486_v4 = vsel %vm1315_vm6, %v2465_v9, 0.0  ;;  %v2466_v10 = vsel %vm2438_vm1, %v2422_v39, 0.0  ;;  %3047 = vrcp.f32 %v2333_v1  ;;  %vm2442_vm7 = vcmp.ne.f32.partialorder %v3085_v6, 0.0  ;;  %v3086_v1 = vld [vmem:[%s3168_s22 + $0xe0] sm:$0xff] }
 0x4f0   : > { %v2487_v11 = vadd.f32 %v2486_v4, %v2485_v13  ;;  %v2488_v43 = vsel %vm1315_vm6, %v2466_v10, 0.0  ;;  %v2378_v14 = vadd.f32 1e-06, %v2362_v50  ;;  %v2318_v52 = vpop.xlane.xlu1 %2317  ;;  %vm2443_vm8 = vcmp.ne.f32.partialorder %v3086_v1, 0.0 }
 0x4f1   : > { %v2334_v34 = vadd.f32 4.8954166e-07, %v2318_v52  ;;  %v1363_v17 = vpop.xlane.xlu0 %1362 }
 0x4f2   : > { %v3525_v36 = vadd.f32 %v2488_v43, %v2487_v11  ;;  %3049 = vlog2.f32 %v2378_v14  ;;  %v3040_v16 = vpop.eup %3039  ;;  %v1364_v19 = vrot.slane %v1363_v17, 4 }
 0x4f3   : > { %3051 = vrcp.f32 %v2334_v34  ;;  %v2400_v49 = vmul.f32 0.6931472, %v3040_v16  ;;  %v3087_v16 = vld [vmem:[%s3168_s22 + $0xe8] sm:$0xff] }
 0x4f4   : > { %v2276_v0 = vpop.xlane.xlu1 %2275  ;;  %v1365_v29 = vadd.f32 %v1364_v19, %v1363_v17  ;;  %vm2444_vm9 = vcmp.ne.f32.partialorder %v3087_v16, 0.0 }
 0x4f5   : > { %v3042_v58 = vpop.eup %3041  ;;  %v2361_v60 = vmul.f32 %v3038_v15, %v2276_v0  ;;  %v2423_v42 = vsub.f32 0.0, %v2400_v49 }
 0x4f6   : > { %v3044_v18 = vpop.eup %3043  ;;  %v2402_v56 = vmul.f32 0.6931472, %v3042_v58  ;;  %v1366_v53 = vrot.slane %v1365_v29, 2 }
 0x4f7   : > { %v2364_v24 = vmul.f32 %v3044_v18, %v2282_v31  ;;  %v2377_v12 = vadd.f32 1e-06, %v2361_v60  ;;  %v3046_v35 = vpop.eup %3045  ;;  %v2467_v38 = vsel %vm2439_vm2, %v2423_v42, 0.0  ;;  %v3084_v31 = vld [vmem:[%s3168_s22 + $0xd0] sm:$0xff] }
 0x4f8   : > { %v2280_v55 = vpop.xlane.xlu1 %2279  ;;  %v2424_v46 = vsub.f32 0.0, %v2402_v56  ;;  %v2490_v62 = vsel %vm1315_vm6, %v2467_v38, 0.0  ;;  %v1367_v3 = vadd.f32 %v1366_v53, %v1365_v29  ;;  %vm2441_vm5 = vcmp.ne.f32.partialorder %v3084_v31, 0.0  ;;  %v3088_v42 = vld [vmem:[%s3168_s22 + $0xf0] sm:$0xff] }
 0x4f9   : > { %v2380_v21 = vadd.f32 1e-06, %v2364_v24  ;;  %3053 = vlog2.f32 %v2377_v12  ;;  %v2363_v28 = vmul.f32 %v3046_v35, %v2280_v55  ;;  %v3048_v61 = vpop.eup %3047  ;;  %v2491_v7 = vadd.f32 %v2490_v62, %v3525_v36 }
 0x4fa   : > { %v2468_v27 = vsel %vm2440_vm3, %v2424_v46, 0.0  ;;  %v1368_v43 = vrot.slane %v1367_v3, 1  ;;  %vm2445_vm10 = vcmp.ne.f32.partialorder %v3088_v42, 0.0 }
 0x4fb   : > { %3055 = vlog2.f32 %v2380_v21  ;;  %v2379_v25 = vadd.f32 1e-06, %v2363_v28  ;;  %v2492_v5 = vsel %vm1315_vm6, %v2468_v27, 0.0 }
 0x4fc   : > { %v3050_v8 = vpop.eup %3049  ;;  %v2284_v30 = vpop.xlane.xlu1 %2283  ;;  %v2493_v10 = vadd.f32 %v2492_v5, %v2491_v7  ;;  %v1369_v19 = vadd.f32 %v1368_v43, %v1367_v3 }
 0x4fd   : > { %v3052_v32 = vpop.eup %3051  ;;  %3057 = vlog2.f32 %v2379_v25  ;;  %v2365_v26 = vmul.f32 %v3048_v61, %v2284_v30  ;;  %v2406_v41 = vmul.f32 0.6931472, %v3050_v8 }
 0x4fe   : > { %v2366_v20 = vmul.f32 %v3052_v32, %v2286_v51  ;;  %3059 = vrcp.f32 %v1357_v48 }
 0x4ff   : > { %v2381_v22 = vadd.f32 1e-06, %v2365_v26  ;;  %v2426_v44 = vsub.f32 0.0, %v2406_v41 }
 0x500   : > { %v1348_v45 = vpop.xlane.xlu1 %1347  ;;  %v2382_v63 = vadd.f32 1e-06, %v2366_v20 }
 0x501   : > { %3061 = vlog2.f32 %v2381_v22  ;;  %v1349_v33 = vrot.slane %v1348_v45, 4  ;;  %v2470_v51 = vsel %vm2442_vm7, %v2426_v44, 0.0 }
 0x502   : > { %3063 = vlog2.f32 %v2382_v63  ;;  %v2496_v24 = vsel %vm1315_vm6, %v2470_v51, 0.0  ;;  %v220_v63 = vand.u32 127, %v219_v23 }
 0x503   : > { %v3054_v2 = vpop.eup %3053  ;;  %v1350_v47 = vadd.f32 %v1349_v33, %v1348_v45 }
 0x504   : > { %v2404_v40 = vmul.f32 0.6931472, %v3054_v2  ;;  %v2451_v54 = vpop.xlane.xlu1 %2450  ;;  %vm1374_vm11 = vcmp.eq.s32.totalorder %v220_v63, 1  ;;  %vm1372_vm12 = vcmp.eq.s32.totalorder %v220_v63, 0 }
 0x505   : > { %v3056_v13 = vpop.eup %3055  ;;  %v1351_v59 = vrot.slane %v1350_v47, 2  ;;  %v2452_v39 = vrot.slane %v2451_v54, 4 }
 0x506   : > { %v2410_v9 = vmul.f32 0.6931472, %v3056_v13  ;;  %v2425_v50 = vsub.f32 0.0, %v2404_v40 }
 0x507   : > { %v3058_v4 = vpop.eup %3057  ;;  %v1352_v11 = vadd.f32 %v1351_v59, %v1350_v47  ;;  %v2453_v14 = vadd.f32 %v2452_v39, %v2451_v54 }
 0x508   : > { %v2428_v52 = vsub.f32 0.0, %v2410_v9  ;;  %v2469_v34 = vsel %vm2441_vm5, %v2425_v50, 0.0  ;;  %v2408_v15 = vmul.f32 0.6931472, %v3058_v4  ;;  %v3060_v58 = vpop.eup %3059  ;;  %v2522_v23 = vpop.xlane.xlu1 %2521 }
 0x509   : > { %v2494_v36 = vsel %vm1315_vm6, %v2469_v34, 0.0  ;;  %v1353_v0 = vrot.slane %v1352_v11, 1  ;;  %v2454_v17 = vrot.slane %v2453_v14, 2  ;;  %v2523_v47 = vrot.slane %v2522_v23, 4 }
 0x50a   : > { %v2495_v60 = vadd.f32 %v2494_v36, %v2493_v10  ;;  %v2427_v18 = vsub.f32 0.0, %v2408_v15  ;;  %v2472_v56 = vsel %vm2444_vm9, %v2428_v52, 0.0 }
 0x50b   : > { %v3062_v49 = vpop.eup %3061  ;;  %v1354_v12 = vadd.f32 %v1353_v0, %v1352_v11  ;;  %v2455_v35 = vadd.f32 %v2454_v17, %v2453_v14  ;;  %v2500_v46 = vsel %vm1315_vm6, %v2472_v56, 0.0  ;;  %v2524_v3 = vadd.f32 %v2523_v47, %v2522_v23 }
 0x50c   : > { %v3064_v55 = vpop.eup %3063  ;;  %v2471_v21 = vsel %vm2443_vm8, %v2427_v18, 0.0  ;;  %v2497_v28 = vadd.f32 %v2496_v24, %v2495_v60  ;;  %v2412_v61 = vmul.f32 0.6931472, %v3062_v49 }
 0x50d   : > { %v2498_v25 = vsel %vm1315_vm6, %v2471_v21, 0.0  ;;  %2867 = vpush %v1354_v12  ;;  %v2414_v29 = vmul.f32 0.6931472, %v3064_v55  ;;  %v2456_v8 = vrot.slane %v2455_v35, 1  ;;  %v2525_v44 = vrot.slane %v2524_v3, 2 }
 0x50e   : > { %v2499_v30 = vadd.f32 %v2498_v25, %v2497_v28  ;;  %v2429_v32 = vsub.f32 0.0, %v2412_v61  ;;  %2869 = vpush %v3060_v58 }
 0x50f   : > { %2871 = vpush %v1369_v19  ;;  %v2430_v26 = vsub.f32 0.0, %v2414_v29  ;;  %v2457_v48 = vadd.f32 %v2456_v8, %v2455_v35  ;;  %v2526_v13 = vadd.f32 %v2525_v44, %v2524_v3 }
 0x510   : > { %v2473_v37 = vsel %vm2445_vm10, %v2429_v32, 0.0  ;;  %v2501_v20 = vadd.f32 %v2500_v46, %v2499_v30 }
 0x511   : > { %v2474_v38 = vsel %vm2446_vm4, %v2430_v26, 0.0  ;;  %v2502_v22 = vsel %vm1315_vm6, %v2473_v37, 0.0  ;;  %2873 = vpush %v2457_v48  ;;  %v2527_v39 = vrot.slane %v2526_v13, 1 }
 0x512   : > { %v2503_v53 = vadd.f32 %v2502_v22, %v2501_v20  ;;  %v2504_v41 = vsel %vm1315_vm6, %v2474_v38, 0.0 }
 0x513   : > { %v2528_v50 = vadd.f32 %v2527_v39, %v2526_v13 }
 0x514   : > { %v2505_v45 = vadd.f32 %v2504_v41, %v2503_v53 }
 0x516   : > { %2506 = vadd.xlane.f32.xlu0 %v2505_v45 }
 0x53e   : > { %s2868_s29 = spop %2867 }
 0x53f   : > { %s2870_s30 = spop %2869 }
 0x540   : > { %s1360_s4 = smul.f32 %s2870_s30, %s2868_s29  ;;  %s2872_s5 = spop %2871 }
 0x541   : > { %p1371_p4 = scmp.ne.f32.partialorder %s2872_s5, 0.0 }
 0x542   : > { %s2874_s10 = spop %2873 }
 0x543   : > { %s3571_s4 = smov (!%p1371_p4, %s1360_s4), 0.0  ;;  %s2515_s11 = smax.f32 %s3101_s27, %s2874_s10 }
 0x544   : > { %s1375_s6 = scalar_select %p1371_p4, 1.0, 0.0  ;;  %v1378_v27 = vstv %s3571_s4  ;;  %v2516_v31 = vstv %s2515_s11 }
 0x545   : > { %3065 = vrcp.f32 %v2516_v31 }
 0x546   : > { %v1376_v33 = vstv %s1375_s6 }
 0x547   : > { %v1377_v62 = vsel %vm1374_vm11, %v1376_v33, 0.0 }
 0x548   : > { %v1379_v2 = vsel %vm1372_vm12, %v1378_v27, %v1377_v62 }
 0x549   : > { %1380 = vst [vmem:[%s3552_s9] sm:$0x1] %v1379_v2 }
 0x54f   : > { %v3066_v9 = vpop.eup %3065 }
 0x5a3   : > { %v2507_v5 = vpop.xlane.xlu0 %2506 }
 0x5a4   : > { %v2508_v40 = vrot.slane %v2507_v5, 4 }
 0x5a6   : > { %v2509_v54 = vadd.f32 %v2508_v40, %v2507_v5 }
 0x5a8   : > { %v2510_v6 = vrot.slane %v2509_v54, 2 }
 0x5aa   : > { %v2511_v7 = vadd.f32 %v2510_v6, %v2509_v54 }
 0x5ac   : > { %v2512_v59 = vrot.slane %v2511_v7, 1 }
 0x5ae   : > { %v2513_v1 = vadd.f32 %v2512_v59, %v2511_v7 }
 0x5b0   : > { %2875 = vpush %v2513_v1 }
 0x5b1   : > { %2877 = vpush %v3066_v9 }
 0x5b2   : > { %2879 = vpush %v2528_v50 }
 0x5e1   : > { %s2876_s13 = spop %2875 }
 0x5e2   : > { %s2878_s14 = spop %2877 }
 0x5e3   : > { %s2519_s15 = smul.f32 %s2878_s14, %s2876_s13  ;;  %s2880_s16 = spop %2879 }
 0x5e4   : > { %p2530_p5 = scmp.ne.f32.partialorder %s2880_s16, 0.0 }
 0x5e6   : > { %s3573_s15 = smov (!%p2530_p5, %s2519_s15), 0.0 }
 0x5e7   : > { %s2532_s17 = scalar_select %p2530_p5, 1.0, 0.0  ;;  %v2535_v4 = vstv %s3573_s15 }
 0x5e9   : > { %v2533_v10 = vstv %s2532_s17 }
 0x5ea   : > { %v2534_v11 = vsel %vm1374_vm11, %v2533_v10, 0.0 }
 0x5eb   : > { %v2536_v43 = vsel %vm1372_vm12, %v2535_v4, %v2534_v11 }
 0x5ec   : > { %2688 = vst [vmem:[%s3552_s9 + $0x1] sm:$0x1] %v2536_v43 }
 0x5ed PF: > { %s13_s12 = sadd.s32 1, %s3096_s12  }
 0x5ee   : > { %p10_p6 = scmp.ge.s32.totalorder %s13_s12, 4  }
 0x5f0   :  { %12 = sbr.rel (!%p10_p6) target bundleno = 1 (0x1), region = 72 }

</bundles_post_ra>
